<compile_context>
chip_gen: v7x
topology: tpu7x:2x2x1
jax: 0.10.0
libtpu: 0.0.40
codegen_flags: <defaults>
</compile_context>

<pallas_src>
import jax
import jax.numpy as jnp
from jax import lax
from jax.experimental import pallas as pl
from jax.experimental.pallas import tpu as pltpu


def _round_up(x, m):
    return ((x + m - 1) // m) * m


def _padded_vmem_bytes(shape, itemsize):
    """VMEM footprint of a tile after (8, 128) sublane/lane layout padding."""
    s = list(shape)
    if len(s) >= 1:
        s[-1] = _round_up(s[-1], 128)
    if len(s) >= 2:
        s[-2] = _round_up(s[-2], 8)
    n = 1
    for d in s:
        n *= int(d)
    return n * itemsize


def _vmem_capacity_bytes():
    """Per-core VMEM capacity; conservative (v7x, 64 MiB) fallback."""
    try:
        info = pltpu.get_tpu_info()
        cap = getattr(info, "vmem_capacity_bytes", None)
        if cap:
            return int(cap)
    except Exception:
        pass
    return 64 * 1024 * 1024


def _make_recurrence_kernel(tt, t_total, needs_mask, use_bf16_wh):
    """Kernel processing up to `tt` timesteps of the recurrence per grid step."""

    def kernel(u_ref, wh_ref, a_ref, om_ref, out_ref):
        t_idx = pl.program_id(1)

        # state = ones(B, n_hid) at the first timestep of each batch block
        # (PyTorch: torch.ones(x.size(1), n_hid)). out_ref IS the resident
        # state accumulator (its block index is constant over the time axis),
        # so no scratch buffer and no last-step-only store are needed.
        @pl.when(t_idx == 0)
        def _():
            out_ref[...] = jnp.ones_like(out_ref)

        # Hoist small grid-invariant loads (JAX does not CSE broadcast_in_dim).
        # Wh is intentionally read inside the loop, not hoisted to a live value.
        a = a_ref[...]        # (1, n_hid)
        om = om_ref[...]      # (1, n_hid)

        if needs_mask:
            # ceiling-div grid: number of valid timesteps in this time block.
            n_valid = jnp.minimum(tt, t_total - t_idx * tt)

        def step(t, state):
            u_t = u_ref[t]    # (bt, n_hid) = Wi(x[t]) + bi, precomputed
            lhs = state.astype(jnp.bfloat16) if use_bf16_wh else state
            wh_s = jnp.dot(lhs, wh_ref[...],
                           preferred_element_type=jnp.float32)
            new_state = a * jnp.cos(om * state + u_t) + wh_s
            if needs_mask:
                # Skip the WHOLE update on padded tail steps (state untouched).
                new_state = jnp.where(t < n_valid, new_state, state)
            return new_state

        out_ref[...] = lax.fori_loop(0, tt, step, out_ref[...], unroll=True)

    return kernel


def psrnn_forward(x, params, *, max_tt=64, use_bf16_wh=False):
    """x: (T, B, n_inp) float32. Returns (B, n_out) — matches psRNN.forward."""
    T, B, n_inp = x.shape
    wi_t = params["wi_t"]      # (n_inp, n_hid)
    bi = params["bi"]          # (1, n_hid)
    wh_t = params["wh_t"]      # (n_hid, n_hid)
    a = params["a"]            # (1, n_hid)
    om = params["omega"]       # (1, n_hid)
    wr_t = params["wr_t"]      # (n_hid, n_out)
    br = params["br"]          # (1, n_out)
    n_hid = wi_t.shape[1]

    if T == 0:
        # Empty sequence: state stays at its ones() initialization.
        final_state = jnp.ones((B, n_hid), jnp.float32)
        return final_state @ wr_t + br

    # Pad batch up to a multiple of 8 (sublane count); padded rows are inert.
    b_pad = max(8, _round_up(B, 8))
    if b_pad != B:
        x = jnp.concatenate(
            [x, jnp.zeros((T, b_pad - B, n_inp), x.dtype)], axis=1)

    # Hoisted input projection: one big, MXU-efficient XLA matmul.
    u = jnp.einsum("tbi,ih->tbh", x, wi_t,
                   preferred_element_type=jnp.float32) + bi   # (T, b_pad, n_hid)

    # Batch blocking: 2 blocks when the batch allows it so v7x's second
    # TensorCore has work on the "parallel" axis (no effect on v5e/v6e: 1 TC).
    nb = 2 if (b_pad >= 16 and b_pad % 16 == 0) else 1
    bt = b_pad // nb

    # ---- Per-generation VMEM budgeting (64 MiB v7x, 128 MiB v5e/v6e) ------
    vmem_cap = _vmem_capacity_bytes()
    wh_itemsize = 2 if use_bf16_wh else 4
    wh_bytes = _padded_vmem_bytes((n_hid, n_hid), wh_itemsize)      # single-buffered
    misc_bytes = (2 * _padded_vmem_bytes((1, n_hid), 4)             # A, omega
                  + 2 * _padded_vmem_bytes((bt, n_hid), 4))         # out (x2)
    per_tt_bytes = 2 * _padded_vmem_bytes((bt, n_hid), 4)           # U double buffer / step
    budget = int(0.7 * vmem_cap)
    tt_cap = max(1, (budget - wh_bytes - misc_bytes) // per_tt_bytes)

    # Timesteps per grid step (amortizes ~0.35 us/step pipeline overhead);
    # ceiling-div + in-kernel masking so odd/prime T never collapses to tt=1.
    tt = int(min(max_tt, T, tt_cap))
    n_t_blocks = int(pl.cdiv(T, tt))
    needs_mask = (T % tt) != 0

    # Pad U along T to a whole number of time blocks so tail reads are
    # well-defined (the kernel masks those steps out of the state update).
    t_padded = n_t_blocks * tt
    if t_padded != T:
        u = jnp.concatenate(
            [u, jnp.zeros((t_padded - T, b_pad, n_hid), u.dtype)], axis=0)

    wh_in = wh_t.astype(jnp.bfloat16) if use_bf16_wh else wh_t

    needed = wh_bytes + misc_bytes + per_tt_bytes * tt
    vmem_limit = int(min(max(needed + (8 << 20), 32 << 20),
                         int(0.95 * vmem_cap)))

    grid_spec = pltpu.PrefetchScalarGridSpec(
        num_scalar_prefetch=0,
        grid=(nb, n_t_blocks),
        in_specs=[
            # Pipelined (double-buffered) U time-blocks.
            pl.BlockSpec((tt, bt, n_hid), lambda b, t: (t, b, 0)),
            # Grid-invariant operands: whole-array, single-buffered VMEM
            # residents (no double-buffering of the n_hid^2 weight tile).
            pl.BlockSpec(memory_space=pltpu.MemorySpace.VMEM),   # Wh^T
            pl.BlockSpec(memory_space=pltpu.MemorySpace.VMEM),   # A
            pl.BlockSpec(memory_space=pltpu.MemorySpace.VMEM),   # omega
        ],
        # Output block doubles as the resident recurrent-state accumulator.
        out_specs=pl.BlockSpec((bt, n_hid), lambda b, t: (b, 0)),
    )

    final_state = pl.pallas_call(
        _make_recurrence_kernel(tt, T, needs_mask, use_bf16_wh),
        out_shape=jax.ShapeDtypeStruct((b_pad, n_hid), jnp.float32),
        grid_spec=grid_spec,
        compiler_params=pltpu.CompilerParams(
            dimension_semantics=("parallel", "arbitrary"),
            vmem_limit_bytes=vmem_limit),
    )(u, wh_in, a, om)

    # Lane-sparse (n_out=4) readout lives in the wrapper: one XLA matmul.
    return final_state[:B] @ wr_t + br


def init_params(key, n_inp, n_hid, n_out):
    """Deterministic synthetic parameters with the same shapes as psRNN.__init__."""
    ks = jax.random.split(key, 7)
    # nn.Linear stores weight as (out_features, in_features); we pre-transpose.
    wi = jax.random.uniform(ks[0], (n_hid, n_inp), jnp.float32, -0.5, 0.5)
    bi = jax.random.uniform(ks[1], (n_hid,), jnp.float32, -0.5, 0.5)
    wh = jax.random.uniform(ks[2], (n_hid, n_hid), jnp.float32, -0.5, 0.5)
    a = jax.random.uniform(ks[3], (n_hid,), jnp.float32)       # torch.rand
    omega = jax.random.uniform(ks[4], (n_hid,), jnp.float32)   # torch.rand
    wr = jax.random.uniform(ks[5], (n_out, n_hid), jnp.float32, -0.5, 0.5)
    br = jax.random.uniform(ks[6], (n_out,), jnp.float32, -0.5, 0.5)
    return {
        "wi_t": wi.T,                   # (n_inp, n_hid)
        "bi": bi.reshape(1, n_hid),
        "wh_t": wh.T,                   # (n_hid, n_hid)
        "a": a.reshape(1, n_hid),
        "omega": omega.reshape(1, n_hid),
        "wr_t": wr.T,                   # (n_hid, n_out)
        "br": br.reshape(1, n_out),
    }


def psrnn_reference(x, params):
    """Pure-JAX reference of the PyTorch forward (for sanity checking)."""
    T, B, _ = x.shape
    n_hid = params["wi_t"].shape[1]
    state = jnp.ones((B, n_hid), jnp.float32)
    for t in range(T):
        u = x[t] @ params["wi_t"] + params["bi"]
        state = params["a"] * jnp.cos(params["omega"] * state + u) \
                + state @ params["wh_t"]
    return state @ params["wr_t"] + params["br"]


if __name__ == "__main__":
    T, B, n_inp, n_hid, n_out = 8, 2, 4, 32, 4
    key = jax.random.PRNGKey(0)
    kx, kp = jax.random.split(key)
    x = jax.random.normal(kx, (T, B, n_inp), jnp.float32)
    params = init_params(kp, n_inp, n_hid, n_out)

    out = psrnn_forward(x, params)
    out = jax.block_until_ready(out)

    ref = psrnn_reference(x, params)
    assert out.shape == (B, n_out)
    assert jnp.allclose(out, ref, atol=1e-4, rtol=1e-4), "mismatch vs reference"
    print("KERNEL_OK")
</pallas_src>

<mosaic_0001>
module attributes {stable_mosaic.version = 11 : i64} {
  func.func @kernel(%arg0: i32, %arg1: i32, %arg2: memref<8x8x32xf32, #tpu.memory_space<vmem>>, %arg3: memref<32x32xf32, #tpu.memory_space<vmem>>, %arg4: memref<1x32xf32, #tpu.memory_space<vmem>>, %arg5: memref<1x32xf32, #tpu.memory_space<vmem>>, %arg6: memref<8x32xf32, #tpu.memory_space<vmem>>) attributes {dimension_semantics = [#tpu.dimension_semantics<parallel>, #tpu.dimension_semantics<arbitrary>], iteration_bounds = array<i64: 1, 1>, scalar_prefetch = 0 : i64, scratch_operands = 0 : i64, tpu.core_type = #tpu.core_type<tc>, window_params = [{transform_indices = @transform_0, window_bounds = array<i64: 8, 8, 32>}, {pipeline_mode = #tpu.pipeline_mode<synchronous>, transform_indices = @transform_1, window_bounds = array<i64: 32, 32>}, {pipeline_mode = #tpu.pipeline_mode<synchronous>, transform_indices = @transform_2, window_bounds = array<i64: 1, 32>}, {pipeline_mode = #tpu.pipeline_mode<synchronous>, transform_indices = @transform_3, window_bounds = array<i64: 1, 32>}, {transform_indices = @transform_4, window_bounds = array<i64: 8, 32>}]} {
    %c0_i32 = arith.constant 0 : i32
    %0 = arith.cmpi eq, %arg1, %c0_i32 : i32
    %1 = arith.extui %0 : i1 to i32
    %c0_i32_0 = arith.constant 0 : i32
    %2 = arith.cmpi ne, %1, %c0_i32_0 : i32
    scf.if %2 {
      %cst_48 = arith.constant 1.000000e+00 : f32
      %103 = vector.broadcast %cst_48 : f32 to vector<8x32xf32>
      %c0_49 = arith.constant 0 : index
      %c0_50 = arith.constant 0 : index
      %104 = vector.load %arg6[%c0_49, %c0_50] : memref<8x32xf32, #tpu.memory_space<vmem>>, vector<8x32xf32>
      tpu.vector_store %arg6[%c0_49, %c0_50], %103 {strides = array<i32>} : memref<8x32xf32, #tpu.memory_space<vmem>>, vector<8x32xf32>,
    } else {
    }
    %c0 = arith.constant 0 : index
    %c0_1 = arith.constant 0 : index
    %3 = vector.load %arg4[%c0, %c0_1] : memref<1x32xf32, #tpu.memory_space<vmem>>, vector<1x32xf32>
    %c0_2 = arith.constant 0 : index
    %c0_3 = arith.constant 0 : index
    %4 = vector.load %arg5[%c0_2, %c0_3] : memref<1x32xf32, #tpu.memory_space<vmem>>, vector<1x32xf32>
    %c0_4 = arith.constant 0 : index
    %c0_5 = arith.constant 0 : index
    %5 = vector.load %arg6[%c0_4, %c0_5] : memref<8x32xf32, #tpu.memory_space<vmem>>, vector<8x32xf32>
    %c0_i32_6 = arith.constant 0 : i32
    %6 = arith.index_cast %c0_i32_6 : i32 to index
    %c0_7 = arith.constant 0 : index
    %c0_8 = arith.constant 0 : index
    %7 = vector.load %arg2[%6, %c0_7, %c0_8] : memref<8x8x32xf32, #tpu.memory_space<vmem>>, vector<1x8x32xf32>
    %8 = vector.shape_cast %7 : vector<1x8x32xf32> to vector<8x32xf32>
    %c0_9 = arith.constant 0 : index
    %c0_10 = arith.constant 0 : index
    %9 = vector.load %arg3[%c0_9, %c0_10] : memref<32x32xf32, #tpu.memory_space<vmem>>, vector<32x32xf32>
    %cst = arith.constant dense<0.000000e+00> : vector<8x32xf32>
    %10 = tpu.matmul %5, %9, %cst {dimension_numbers = #tpu.dot_dimension_numbers<[1], [0], [0], [1], [0, 0, 1, 1], [], []>} : vector<8x32xf32>, vector<32x32xf32>, vector<8x32xf32> -> vector<8x32xf32>
    %11 = vector.broadcast %4 : vector<1x32xf32> to vector<8x32xf32>
    %12 = arith.mulf %11, %5 : vector<8x32xf32>
    %13 = arith.addf %12, %8 : vector<8x32xf32>
    %14 = math.cos %13 : vector<8x32xf32>
    %15 = vector.broadcast %3 : vector<1x32xf32> to vector<8x32xf32>
    %16 = arith.mulf %15, %14 : vector<8x32xf32>
    %17 = arith.addf %16, %10 : vector<8x32xf32>
    %c1_i32 = arith.constant 1 : i32
    %18 = arith.index_cast %c1_i32 : i32 to index
    %c0_11 = arith.constant 0 : index
    %c0_12 = arith.constant 0 : index
    %19 = vector.load %arg2[%18, %c0_11, %c0_12] : memref<8x8x32xf32, #tpu.memory_space<vmem>>, vector<1x8x32xf32>
    %20 = vector.shape_cast %19 : vector<1x8x32xf32> to vector<8x32xf32>
    %c0_13 = arith.constant 0 : index
    %c0_14 = arith.constant 0 : index
    %21 = vector.load %arg3[%c0_13, %c0_14] : memref<32x32xf32, #tpu.memory_space<vmem>>, vector<32x32xf32>
    %cst_15 = arith.constant dense<0.000000e+00> : vector<8x32xf32>
    %22 = tpu.matmul %17, %21, %cst_15 {dimension_numbers = #tpu.dot_dimension_numbers<[1], [0], [0], [1], [0, 0, 1, 1], [], []>} : vector<8x32xf32>, vector<32x32xf32>, vector<8x32xf32> -> vector<8x32xf32>
    %23 = vector.broadcast %4 : vector<1x32xf32> to vector<8x32xf32>
    %24 = arith.mulf %23, %17 : vector<8x32xf32>
    %25 = arith.addf %24, %20 : vector<8x32xf32>
    %26 = math.cos %25 : vector<8x32xf32>
    %27 = vector.broadcast %3 : vector<1x32xf32> to vector<8x32xf32>
    %28 = arith.mulf %27, %26 : vector<8x32xf32>
    %29 = arith.addf %28, %22 : vector<8x32xf32>
    %c2_i32 = arith.constant 2 : i32
    %30 = arith.index_cast %c2_i32 : i32 to index
    %c0_16 = arith.constant 0 : index
    %c0_17 = arith.constant 0 : index
    %31 = vector.load %arg2[%30, %c0_16, %c0_17] : memref<8x8x32xf32, #tpu.memory_space<vmem>>, vector<1x8x32xf32>
    %32 = vector.shape_cast %31 : vector<1x8x32xf32> to vector<8x32xf32>
    %c0_18 = arith.constant 0 : index
    %c0_19 = arith.constant 0 : index
    %33 = vector.load %arg3[%c0_18, %c0_19] : memref<32x32xf32, #tpu.memory_space<vmem>>, vector<32x32xf32>
    %cst_20 = arith.constant dense<0.000000e+00> : vector<8x32xf32>
    %34 = tpu.matmul %29, %33, %cst_20 {dimension_numbers = #tpu.dot_dimension_numbers<[1], [0], [0], [1], [0, 0, 1, 1], [], []>} : vector<8x32xf32>, vector<32x32xf32>, vector<8x32xf32> -> vector<8x32xf32>
    %35 = vector.broadcast %4 : vector<1x32xf32> to vector<8x32xf32>
    %36 = arith.mulf %35, %29 : vector<8x32xf32>
    %37 = arith.addf %36, %32 : vector<8x32xf32>
    %38 = math.cos %37 : vector<8x32xf32>
    %39 = vector.broadcast %3 : vector<1x32xf32> to vector<8x32xf32>
    %40 = arith.mulf %39, %38 : vector<8x32xf32>
    %41 = arith.addf %40, %34 : vector<8x32xf32>
    %c3_i32 = arith.constant 3 : i32
    %42 = arith.index_cast %c3_i32 : i32 to index
    %c0_21 = arith.constant 0 : index
    %c0_22 = arith.constant 0 : index
    %43 = vector.load %arg2[%42, %c0_21, %c0_22] : memref<8x8x32xf32, #tpu.memory_space<vmem>>, vector<1x8x32xf32>
    %44 = vector.shape_cast %43 : vector<1x8x32xf32> to vector<8x32xf32>
    %c0_23 = arith.constant 0 : index
    %c0_24 = arith.constant 0 : index
    %45 = vector.load %arg3[%c0_23, %c0_24] : memref<32x32xf32, #tpu.memory_space<vmem>>, vector<32x32xf32>
    %cst_25 = arith.constant dense<0.000000e+00> : vector<8x32xf32>
    %46 = tpu.matmul %41, %45, %cst_25 {dimension_numbers = #tpu.dot_dimension_numbers<[1], [0], [0], [1], [0, 0, 1, 1], [], []>} : vector<8x32xf32>, vector<32x32xf32>, vector<8x32xf32> -> vector<8x32xf32>
    %47 = vector.broadcast %4 : vector<1x32xf32> to vector<8x32xf32>
    %48 = arith.mulf %47, %41 : vector<8x32xf32>
    %49 = arith.addf %48, %44 : vector<8x32xf32>
    %50 = math.cos %49 : vector<8x32xf32>
    %51 = vector.broadcast %3 : vector<1x32xf32> to vector<8x32xf32>
    %52 = arith.mulf %51, %50 : vector<8x32xf32>
    %53 = arith.addf %52, %46 : vector<8x32xf32>
    %c4_i32 = arith.constant 4 : i32
    %54 = arith.index_cast %c4_i32 : i32 to index
    %c0_26 = arith.constant 0 : index
    %c0_27 = arith.constant 0 : index
    %55 = vector.load %arg2[%54, %c0_26, %c0_27] : memref<8x8x32xf32, #tpu.memory_space<vmem>>, vector<1x8x32xf32>
    %56 = vector.shape_cast %55 : vector<1x8x32xf32> to vector<8x32xf32>
    %c0_28 = arith.constant 0 : index
    %c0_29 = arith.constant 0 : index
    %57 = vector.load %arg3[%c0_28, %c0_29] : memref<32x32xf32, #tpu.memory_space<vmem>>, vector<32x32xf32>
    %cst_30 = arith.constant dense<0.000000e+00> : vector<8x32xf32>
    %58 = tpu.matmul %53, %57, %cst_30 {dimension_numbers = #tpu.dot_dimension_numbers<[1], [0], [0], [1], [0, 0, 1, 1], [], []>} : vector<8x32xf32>, vector<32x32xf32>, vector<8x32xf32> -> vector<8x32xf32>
    %59 = vector.broadcast %4 : vector<1x32xf32> to vector<8x32xf32>
    %60 = arith.mulf %59, %53 : vector<8x32xf32>
    %61 = arith.addf %60, %56 : vector<8x32xf32>
    %62 = math.cos %61 : vector<8x32xf32>
    %63 = vector.broadcast %3 : vector<1x32xf32> to vector<8x32xf32>
    %64 = arith.mulf %63, %62 : vector<8x32xf32>
    %65 = arith.addf %64, %58 : vector<8x32xf32>
    %c5_i32 = arith.constant 5 : i32
    %66 = arith.index_cast %c5_i32 : i32 to index
    %c0_31 = arith.constant 0 : index
    %c0_32 = arith.constant 0 : index
    %67 = vector.load %arg2[%66, %c0_31, %c0_32] : memref<8x8x32xf32, #tpu.memory_space<vmem>>, vector<1x8x32xf32>
    %68 = vector.shape_cast %67 : vector<1x8x32xf32> to vector<8x32xf32>
    %c0_33 = arith.constant 0 : index
    %c0_34 = arith.constant 0 : index
    %69 = vector.load %arg3[%c0_33, %c0_34] : memref<32x32xf32, #tpu.memory_space<vmem>>, vector<32x32xf32>
    %cst_35 = arith.constant dense<0.000000e+00> : vector<8x32xf32>
    %70 = tpu.matmul %65, %69, %cst_35 {dimension_numbers = #tpu.dot_dimension_numbers<[1], [0], [0], [1], [0, 0, 1, 1], [], []>} : vector<8x32xf32>, vector<32x32xf32>, vector<8x32xf32> -> vector<8x32xf32>
    %71 = vector.broadcast %4 : vector<1x32xf32> to vector<8x32xf32>
    %72 = arith.mulf %71, %65 : vector<8x32xf32>
    %73 = arith.addf %72, %68 : vector<8x32xf32>
    %74 = math.cos %73 : vector<8x32xf32>
    %75 = vector.broadcast %3 : vector<1x32xf32> to vector<8x32xf32>
    %76 = arith.mulf %75, %74 : vector<8x32xf32>
    %77 = arith.addf %76, %70 : vector<8x32xf32>
    %c6_i32 = arith.constant 6 : i32
    %78 = arith.index_cast %c6_i32 : i32 to index
    %c0_36 = arith.constant 0 : index
    %c0_37 = arith.constant 0 : index
    %79 = vector.load %arg2[%78, %c0_36, %c0_37] : memref<8x8x32xf32, #tpu.memory_space<vmem>>, vector<1x8x32xf32>
    %80 = vector.shape_cast %79 : vector<1x8x32xf32> to vector<8x32xf32>
    %c0_38 = arith.constant 0 : index
    %c0_39 = arith.constant 0 : index
    %81 = vector.load %arg3[%c0_38, %c0_39] : memref<32x32xf32, #tpu.memory_space<vmem>>, vector<32x32xf32>
    %cst_40 = arith.constant dense<0.000000e+00> : vector<8x32xf32>
    %82 = tpu.matmul %77, %81, %cst_40 {dimension_numbers = #tpu.dot_dimension_numbers<[1], [0], [0], [1], [0, 0, 1, 1], [], []>} : vector<8x32xf32>, vector<32x32xf32>, vector<8x32xf32> -> vector<8x32xf32>
    %83 = vector.broadcast %4 : vector<1x32xf32> to vector<8x32xf32>
    %84 = arith.mulf %83, %77 : vector<8x32xf32>
    %85 = arith.addf %84, %80 : vector<8x32xf32>
    %86 = math.cos %85 : vector<8x32xf32>
    %87 = vector.broadcast %3 : vector<1x32xf32> to vector<8x32xf32>
    %88 = arith.mulf %87, %86 : vector<8x32xf32>
    %89 = arith.addf %88, %82 : vector<8x32xf32>
    %c7_i32 = arith.constant 7 : i32
    %90 = arith.index_cast %c7_i32 : i32 to index
    %c0_41 = arith.constant 0 : index
    %c0_42 = arith.constant 0 : index
    %91 = vector.load %arg2[%90, %c0_41, %c0_42] : memref<8x8x32xf32, #tpu.memory_space<vmem>>, vector<1x8x32xf32>
    %92 = vector.shape_cast %91 : vector<1x8x32xf32> to vector<8x32xf32>
    %c0_43 = arith.constant 0 : index
    %c0_44 = arith.constant 0 : index
    %93 = vector.load %arg3[%c0_43, %c0_44] : memref<32x32xf32, #tpu.memory_space<vmem>>, vector<32x32xf32>
    %cst_45 = arith.constant dense<0.000000e+00> : vector<8x32xf32>
    %94 = tpu.matmul %89, %93, %cst_45 {dimension_numbers = #tpu.dot_dimension_numbers<[1], [0], [0], [1], [0, 0, 1, 1], [], []>} : vector<8x32xf32>, vector<32x32xf32>, vector<8x32xf32> -> vector<8x32xf32>
    %95 = vector.broadcast %4 : vector<1x32xf32> to vector<8x32xf32>
    %96 = arith.mulf %95, %89 : vector<8x32xf32>
    %97 = arith.addf %96, %92 : vector<8x32xf32>
    %98 = math.cos %97 : vector<8x32xf32>
    %99 = vector.broadcast %3 : vector<1x32xf32> to vector<8x32xf32>
    %100 = arith.mulf %99, %98 : vector<8x32xf32>
    %101 = arith.addf %100, %94 : vector<8x32xf32>
    %c8_i32 = arith.constant 8 : i32
    %c0_46 = arith.constant 0 : index
    %c0_47 = arith.constant 0 : index
    %102 = vector.load %arg6[%c0_46, %c0_47] : memref<8x32xf32, #tpu.memory_space<vmem>>, vector<8x32xf32>
    tpu.vector_store %arg6[%c0_46, %c0_47], %101 {strides = array<i32>} : memref<8x32xf32, #tpu.memory_space<vmem>>, vector<8x32xf32>,
    return
  }
  func.func @transform_0(%arg0: i32, %arg1: i32) -> (i32, i32, i32) {
    %c0_i32 = arith.constant 0 : i32
    %c0_i32_0 = arith.constant 0 : i32
    return %arg1, %arg0, %c0_i32 : i32, i32, i32
  }
  func.func @transform_1(%arg0: i32, %arg1: i32) -> (i32, i32) {
    %c0_i32 = arith.constant 0 : i32
    %c0_i32_0 = arith.constant 0 : i32
    %c0_i32_1 = arith.constant 0 : i32
    return %c0_i32, %c0_i32_0 : i32, i32
  }
  func.func @transform_2(%arg0: i32, %arg1: i32) -> (i32, i32) {
    %c0_i32 = arith.constant 0 : i32
    %c0_i32_0 = arith.constant 0 : i32
    %c0_i32_1 = arith.constant 0 : i32
    return %c0_i32, %c0_i32_0 : i32, i32
  }
  func.func @transform_3(%arg0: i32, %arg1: i32) -> (i32, i32) {
    %c0_i32 = arith.constant 0 : i32
    %c0_i32_0 = arith.constant 0 : i32
    %c0_i32_1 = arith.constant 0 : i32
    return %c0_i32, %c0_i32_0 : i32, i32
  }
  func.func @transform_4(%arg0: i32, %arg1: i32) -> (i32, i32) {
    %c0_i32 = arith.constant 0 : i32
    %c0_i32_0 = arith.constant 0 : i32
    return %arg0, %c0_i32 : i32, i32
  }
}

</mosaic_0001>

<bundles_post_ra>
// kernel: tpu_custom_call.1
= control target key start
LH: loop header
LB: loop body
LE: loop exit
PB: predicated region body
PF: predicated region fallthrough
CT: control target
= control target key end

     0   :  { %9 = vsyncpa [#allocation3], 0  ;;  %s2357_s0 = inlined_call_operand.hbm [shape: f32[8,8,32], index: 0, kind: input, shape index: {}]   ;;  %s2358_s1 = inlined_call_operand.hbm [shape: f32[32,32], index: 1, kind: input, shape index: {}]   ;;  %s2359_s2 = inlined_call_operand.vmem [shape: f32[1,32], index: 2, kind: input, shape index: {}]   ;;  %s2360_s3 = inlined_call_operand.vmem [shape: f32[1,32], index: 3, kind: input, shape index: {}]   ;;  %s2361_s4 = inlined_call_operand.hbm [shape: f32[8,32], index: 4, kind: output, shape index: {}]  }
   0x1   :  { %10 = vsyncpa [#allocation6], 0 }
   0x2   :  { %11 = vsyncpa [#allocation4], 0  ;;  %s1915_s15 = smov [#allocation2]   ;;  %s1843_s19 = scalar_lea.hbm %s2357_s0, 1024 }
   0x3   :  { %s17_s16 = sshll.u32 %s1915_s15, 4  ;;  %p1844_p0 = scmp.ne.s32.totalorder %s2357_s0, %s1843_s19  ;;  %s18_s16 = int_to_ptr.vmem [resolvable:$true] %s17_s16 }
   0x4   :  { %p1847_p1 = scmp.lt.u32.totalorder %s1843_s19, %s2357_s0 }
   0x6   :  { %p1849_p2 = pnand %p1847_p1, %p1844_p0 }
   0x8   :  { %1852 = shalt.err (!%p1849_p2)
}
   0x9   :  { %s1853_s24 = scalar_lea.vmem %s18_s16, 1024  ;;  %p1858_p4 = scmp.lt.s32.totalorder %s18_s16, %s18_s16 }
   0xa   :  { %p1854_p3 = scmp.ne.s32.totalorder %s18_s16, %s1853_s24  ;;  %p1859_p5 = scmp.lt.s32.totalorder %s1853_s24, %s1853_s24 }
   0xc   :  { %p1860_p6 = por %p1859_p5, %p1858_p4 }
   0xe   :  { %p1861_p7 = pnand %p1860_p6, %p1854_p3 }
  0x10   :  { %1864 = shalt.err (!%p1861_p7)
}
  0x11   :  { %s1916_s25 = smov 128   ;;  %s1917_s26 = smov 8  }
  0x12   :  { %23 = dma.hbm_to_vmem [thread:$0]  %s2357_s0, 1024, %s18_s16, [#allocation3], %s1916_s25, %s1916_s25, %s1917_s26  }
  0x13   :  { %s1918_s29 = smov [#allocation5]   ;;  %s1865_s7 = scalar_lea.hbm %s2358_s1, 512 }
  0x14   :  { %s29_s30 = sshll.u32 %s1918_s29, 4  ;;  %p1866_p8 = scmp.ne.s32.totalorder %s2358_s1, %s1865_s7  ;;  %s30_s30 = int_to_ptr.vmem [resolvable:$true] %s29_s30 }
  0x15   :  { %p1869_p9 = scmp.lt.u32.totalorder %s1865_s7, %s2358_s1 }
  0x17   :  { %p1871_p10 = pnand %p1869_p9, %p1866_p8 }
  0x19   :  { %1874 = shalt.err (!%p1871_p10)
}
  0x1a   :  { %s1875_s12 = scalar_lea.vmem %s30_s30, 512  ;;  %p1880_p12 = scmp.lt.s32.totalorder %s30_s30, %s30_s30 }
  0x1b   :  { %p1876_p11 = scmp.ne.s32.totalorder %s30_s30, %s1875_s12  ;;  %p1881_p13 = scmp.lt.s32.totalorder %s1875_s12, %s1875_s12 }
  0x1d   :  { %p1882_p0 = por %p1881_p13, %p1880_p12 }
  0x1f   :  { %p1883_p1 = pnand %p1882_p0, %p1876_p11 }
  0x21   :  { %1886 = shalt.err (!%p1883_p1)
}
  0x22   :  { %35 = dma.hbm_to_vmem [thread:$0]  %s2358_s1, 512, %s30_s30, [#allocation6], %s1916_s25, %s1916_s25, %s1917_s26  }
  0x23   :  { %1909 = dma.done.wait [#allocation3], 1024  }
  0x24   :  { %1910 = vsyncadd [#allocation3], 4294966272 }
  0x25   :  { %1911 = dma.done.wait [#allocation6], 512  }
  0x26   :  { %1912 = vsyncadd [#allocation6], 4294966784  ;;  %vm50_vm0 = vcmask 261120   ;;  %v1919_v0 = vmov 0.0|0.0   ;;  %vm1920_vm1 = vmmov 0   ;;  %v1921_v1 = vmov 0.0  }
  0x27   :  { %1714 = vmatprep.subr.bf16.mxu0 %v1919_v0  ;;  %1634 = vmatprep.mubr.msk.f32.mxu0 %vm1920_vm1, %v1921_v1  ;;  %v1922_v2 = vmov 1.0   ;;  %v56_v3 = vld [vmem:[#allocation5] sm:$0xff]  ;;  %v57_v4 = vld [vmem:[#allocation5 + $0x8] sm:$0xff]  ;;  %v58_v5 = vld [vmem:[#allocation5 + $0x10] sm:$0xff]  ;;  %v1923_v21 = vmov 2102212464  }
  0x28   :  { %51 = vst.msk [vmem:[#allocation7] sm:$0xff] %vm50_vm0, %v1922_v2  ;;  %1720 = vmatprep.subr.bf16.mxu1 %v1919_v0  ;;  %1645 = vmatprep.mubr.msk.f32.mxu1 %vm1920_vm1, %v1921_v1  ;;  %v1986_v6 = vpack.c.bf16 %v57_v4, %v56_v3  ;;  %v59_v7 = vld [vmem:[#allocation5 + $0x18] sm:$0xff]  ;;  %v2008_v10 = vld [vmem:[%s2360_s3] ss:$0 sm:$0xff]  ;;  %v1924_v23 = vmov 920167782  }
  0x29   :  { %v1989_v8 = vpack.c.bf16 %v59_v7, %v58_v5  ;;  %v55_v12 = vld [vmem:[#allocation2] sm:$0xff]  ;;  %v1925_v28 = vmov 1326507024   ;;  %v1926_v30 = vmov 683565275  }
  0x2a   :  { %1716 = vmatpush3.bf16.msra.mxu0 %v1986_v6  ;;  %1722 = vmatpush3.bf16.msra.mxu1 %v1986_v6  ;;  %v1927_v32 = vmov 2475754826   ;;  %v1928_v35 = vmov 2131351028  }
  0x2b   :  { %1717 = vmatprep.subr.bf16.mxu0 %v1919_v0  ;;  %1723 = vmatprep.subr.bf16.mxu1 %v1919_v0 }
  0x2e   :  { %1719 = vmatpush3.bf16.msra.mxu0 %v1989_v8  ;;  %1725 = vmatpush3.bf16.msra.mxu1 %v1989_v8 }
  0x2f   :  { %v54_v9 = vld [vmem:[#allocation7] sm:$0xff]  ;;  %1726 = vmatprep.subr.bf16.mxu0 %v1919_v0  ;;  %1732 = vmatprep.subr.bf16.mxu1 %v1919_v0 }
  0x30   :  { %v140_v11 = vmul.f32 %v2008_v10, %v54_v9 }
  0x31   :  { %1635 = vmatmul.mubr.msk.f32.vlgmr.msra.gmra.mrb[0].mxu0 %vm50_vm0, %v54_v9 }
  0x32   :  { %1728 = vmatpush3.bf16.msra.mxu0 %v1986_v6  ;;  %1656 = vmatprep.mubr.msk.f32.mxu0 %vm1920_vm1, %v1921_v1  ;;  %v2011_v13 = vadd.f32 %v140_v11, %v55_v12 }
  0x33   :  { %1729 = vmatprep.subr.bf16.mxu0 %v1919_v0 }
  0x34   :  { %v145_v14 = vand.u32 2139095040, %v2011_v13  ;;  %v142_v26 = vand.u32 2147483647, %v2011_v13  ;;  %vm144_vm9 = vcmp.lt.s32.totalorder %v2011_v13, 0  ;;  %vm234_vm14 = vweird.f32 %v2011_v13 }
  0x36   :  { %1731 = vmatpush3.bf16.msra.mxu0 %v1989_v8  ;;  %v146_v15 = vshrl.u32 %v145_v14, 23  ;;  %v149_v40 = vand.u32 8388607, %v142_v26  ;;  %vm143_vm10 = vcmp.le.f32.partialorder %v142_v26, 0.7853982 }
  0x37   :  { %1738 = vmatprep.subr.bf16.mxu0 %v1919_v0 }
  0x38   :  { %v1546_v16 = vadd.s32 4294967169, %v146_v15  ;;  %v150_v46 = vor.u32 8388608, %v149_v40 }
  0x3a   :  { %v152_v17 = vadd.s32 1, %v1546_v16  ;;  %v190_v52 = vshll.u32 %v150_v46, 8 }
  0x3c   :  { %vm153_vm2 = vcmp.gt.s32.totalorder %v152_v17, 0 }
  0x3d   :  { %v154_v18 = vsel %vm153_vm2, %v152_v17, 0 }
  0x3e   :  { %v156_v19 = vand.u32 31, %v154_v18  ;;  %v155_v25 = vshrl.u32 %v154_v18, 5 }
  0x40   :  { %v157_v20 = vsub.s32 32, %v156_v19  ;;  %v168_v22 = vshll.u32 %v1923_v21, %v156_v19  ;;  %v171_v27 = vshll.u32 %v1924_v23, %v156_v19  ;;  %v159_v31 = vshll.u32 %v1926_v30, %v156_v19 }
  0x41   :  { %v162_v34 = vshll.u32 %v1927_v32, %v156_v19  ;;  %v165_v37 = vshll.u32 %v1928_v35, %v156_v19  ;;  %vm177_vm3 = vcmp.lt.s32.totalorder %v155_v25, 4  ;;  %vm174_vm4 = vcmp.lt.s32.totalorder %v155_v25, 1 }
  0x42   :  { %v169_v24 = vshrl.u32 %v1924_v23, %v157_v20  ;;  %v172_v29 = vshrl.u32 %v1925_v28, %v157_v20  ;;  %v160_v33 = vshrl.u32 %v1927_v32, %v157_v20  ;;  %v163_v36 = vshrl.u32 %v1928_v35, %v157_v20 }
  0x43   :  { %v166_v38 = vshrl.u32 %v1923_v21, %v157_v20  ;;  %vm176_vm5 = vcmp.lt.s32.totalorder %v155_v25, 3  ;;  %vm175_vm6 = vcmp.lt.s32.totalorder %v155_v25, 2  ;;  %v158_v57 = vshrl.u32 %v1926_v30, %v157_v20 }
  0x44   :  { %v170_v39 = vor.u32 %v169_v24, %v168_v22  ;;  %v173_v41 = vor.u32 %v172_v29, %v171_v27  ;;  %v161_v42 = vor.u32 %v160_v33, %v159_v31  ;;  %v164_v43 = vor.u32 %v163_v36, %v162_v34 }
  0x45   :  { %v167_v44 = vor.u32 %v166_v38, %v165_v37 }
  0x46   :  { %v183_v45 = vsel %vm177_vm3, %v170_v39, 920167782  ;;  %v187_v47 = vsel %vm177_vm3, %v173_v41, 1326507024  ;;  %v182_v48 = vsel %vm174_vm4, %v161_v42, %v164_v43  ;;  %v178_v61 = vsel %vm174_vm4, %v158_v57, %v161_v42  ;;  %v254_v57 = vld [vmem:[#allocation2 + $0x8] sm:$0xff] }
  0x47   :  { %v184_v49 = vsel %vm176_vm5, %v167_v44, %v183_v45  ;;  %v186_v50 = vsel %vm174_vm4, %v164_v43, %v167_v44  ;;  %v188_v51 = vsel %vm176_vm5, %v170_v39, %v187_v47  ;;  %v179_v60 = vsel %vm177_vm3, %v167_v44, 2102212464 }
  0x48   :  { %v185_v53 = vsel %vm175_vm6, %v182_v48, %v184_v49  ;;  %v189_v54 = vsel %vm175_vm6, %v186_v50, %v188_v51  ;;  %v180_v62 = vsel %vm176_vm5, %v164_v43, %v179_v60  ;;  %v2058_v51 = vld [vmem:[%s2359_s2] ss:$0 sm:$0xff] }
  0x49   :  { %v2035_v55 = vmul.u32.u64.low %v190_v52, %v185_v53  ;;  %v2036_v56 = vmul.u32.u64.high %v190_v52, %v185_v53, %v2035_v55  ;;  %v2039_v58 = vmul.u32.u64.low %v190_v52, %v189_v54  ;;  %v2040_v59 = vmul.u32.u64.high %v190_v52, %v189_v54, %v2039_v58 }
  0x4a   :  { %v181_v63 = vsel %vm175_vm6, %v178_v61, %v180_v62 }
  0x4b   :  { %v200_v2 = vadd.s32 1, %v2036_v56  ;;  %vm199_vm7 = vc.u32 %v2040_v59, %v2035_v55  ;;  %v197_v3 = vmul.u32 %v190_v52, %v181_v63  ;;  %v198_v20 = vadd.s32 %v2035_v55, %v2040_v59 }
  0x4d   :  { %v201_v4 = vsel %vm199_vm7, %v200_v2, %v2036_v56 }
  0x4e   :  { %v202_v5 = vadd.s32 %v201_v4, %v197_v3 }
  0x50   :  { %v203_v7 = vadd.s32 536870912, %v202_v5 }
  0x52   :  { %v204_v9 = vshrl.u32 %v203_v7, 30 }
  0x54   :  { %v205_v11 = vshll.u32 %v204_v9, 30  ;;  %v228_v41 = vsub.s32 4, %v204_v9 }
  0x56   :  { %v206_v12 = vsub.s32 %v202_v5, %v205_v11  ;;  %v229_v42 = vsel %vm144_vm9, %v228_v41, %v204_v9 }
  0x57   :  { %v231_v43 = vsel %vm143_vm10, 0, %v229_v42 }
  0x58   :  { %v208_v14 = vsub.s32 0, %v206_v12  ;;  %v235_v46 = vand.u32 3, %v231_v43 }
  0x5a   :  { %v1547_v15 = vmin.u32 %v208_v14, %v206_v12  ;;  %vm237_vm11 = vcmp.eq.s32.totalorder %v235_v46, 0  ;;  %vm240_vm12 = vcmp.eq.s32.totalorder %v235_v46, 2  ;;  %vm236_vm13 = vcmp.lt.s32.totalorder %v235_v46, 2 }
  0x5c   :  { %v210_v16 = vclz %v1547_v15 }
  0x5e   :  { %v1548_v17 = vadd.s32 4294967294, %v210_v16 }
  0x60   :  { %vm1549_vm8 = vcmp.lt.s32.totalorder %v1548_v17, 0 }
  0x61   :  { %v213_v18 = vsel %vm1549_vm8, 0, %v1548_v17 }
  0x62   :  { %v218_v19 = vsub.s32 4294967266, %v213_v18  ;;  %v214_v22 = vsub.s32 32, %v213_v18  ;;  %v215_v25 = vshll.u32 %v206_v12, %v213_v18 }
  0x64   :  { %v219_v24 = vadd.s32 127, %v218_v19  ;;  %v216_v27 = vshrl.u32 %v198_v20, %v214_v22 }
  0x66   :  { %v220_v29 = vshll.u32 %v219_v24, 23  ;;  %v217_v31 = vor.u32 %v216_v27, %v215_v25 }
  0x68   :  { %v221_v33 = vor.u32 4788187, %v220_v29  ;;  %v224_v36 = vcvt.s32.f32 %v217_v31 }
  0x6a   :  { %v222_v34 = vand.u32 2147483647, %v221_v33 }
  0x6c   :  { %v225_v37 = vmul.f32 %v224_v36, %v222_v34 }
  0x6e   :  { %v226_v38 = vxor.u32 2147483648, %v225_v37 }
  0x70   :  { %v227_v39 = vsel %vm144_vm9, %v226_v38, %v225_v37 }
  0x71   :  { %v230_v40 = vsel %vm143_vm10, %v2011_v13, %v227_v39 }
  0x72   :  { %1809 = vcosq.f32 %v230_v40 }
  0x73   :  { %1811 = vsinq.f32 %v230_v40 }
  0x7c   :  { %v1810_v44 = vpop.eup %1809 }
  0x7d   :  { %v1812_v45 = vpop.eup %1811  ;;  %v241_v48 = vxor.u32 2147483648, %v1810_v44 }
  0x7e   :  { %v238_v47 = vxor.u32 2147483648, %v1812_v45 }
  0x7f   :  { %v242_v50 = vsel %vm240_vm12, %v241_v48, %v1812_v45 }
  0x80   :  { %v239_v49 = vsel %vm237_vm11, %v1810_v44, %v238_v47 }
  0x81   :  { %v243_v26 = vsel %vm236_vm13, %v239_v49, %v242_v50 }
  0x82   :  { %v244_v52 = vsel %vm234_vm14, nan, %v243_v26 }
  0x83   :  { %v251_v53 = vmul.f32 %v2058_v51, %v244_v52 }
 0x104   :  { %v130_v54 = vpop.f32.mrb[0].mxu0 }
 0x105   :  { %v252_v55 = vadd.f32 %v251_v53, %v130_v54  ;;  %v1636_v56 = vpop.f32.mrb[1].mxu0 }
 0x107   :  { %v328_v58 = vmul.f32 %v2008_v10, %v252_v55  ;;  %1646 = vmatmul.mubr.msk.f32.vlgmr.msra.gmra.mrb[0].mxu1 %vm50_vm0, %v252_v55 }
 0x108   :  { %1734 = vmatpush3.bf16.msra.mxu1 %v1986_v6  ;;  %1667 = vmatprep.mubr.msk.f32.mxu1 %vm1920_vm1, %v1921_v1 }
 0x109   :  { %v2066_v13 = vadd.f32 %v328_v58, %v254_v57  ;;  %1735 = vmatprep.subr.bf16.mxu1 %v1919_v0 }
 0x10b   :  { %v333_v59 = vand.u32 2139095040, %v2066_v13  ;;  %v330_v63 = vand.u32 2147483647, %v2066_v13  ;;  %vm332_vm8 = vcmp.lt.s32.totalorder %v2066_v13, 0  ;;  %vm422_vm13 = vweird.f32 %v2066_v13 }
 0x10c   :  { %1737 = vmatpush3.bf16.msra.mxu1 %v1989_v8 }
 0x10d   :  { %v334_v60 = vshrl.u32 %v333_v59, 23  ;;  %1744 = vmatprep.subr.bf16.mxu1 %v1919_v0  ;;  %v337_v5 = vand.u32 8388607, %v330_v63  ;;  %vm331_vm9 = vcmp.le.f32.partialorder %v330_v63, 0.7853982 }
 0x10f   :  { %v1552_v61 = vadd.s32 4294967169, %v334_v60  ;;  %v338_v22 = vor.u32 8388608, %v337_v5 }
 0x111   :  { %v340_v62 = vadd.s32 1, %v1552_v61  ;;  %v378_v42 = vshll.u32 %v338_v22, 8 }
 0x113   :  { %vm341_vm15 = vcmp.gt.s32.totalorder %v340_v62, 0 }
 0x114   :  { %v342_v2 = vsel %vm341_vm15, %v340_v62, 0 }
 0x115   :  { %v344_v3 = vand.u32 31, %v342_v2  ;;  %v343_v7 = vshrl.u32 %v342_v2, 5 }
 0x117   :  { %v345_v4 = vsub.s32 32, %v344_v3  ;;  %v347_v9 = vshll.u32 %v1926_v30, %v344_v3  ;;  %v350_v11 = vshll.u32 %v1927_v32, %v344_v3  ;;  %v353_v15 = vshll.u32 %v1928_v35, %v344_v3 }
 0x118   :  { %v356_v17 = vshll.u32 %v1923_v21, %v344_v3  ;;  %v359_v19 = vshll.u32 %v1924_v23, %v344_v3  ;;  %vm362_vm2 = vcmp.lt.s32.totalorder %v343_v7, 1  ;;  %vm365_vm3 = vcmp.lt.s32.totalorder %v343_v7, 4 }
 0x119   :  { %v348_v12 = vshrl.u32 %v1927_v32, %v345_v4  ;;  %v351_v14 = vshrl.u32 %v1928_v35, %v345_v4  ;;  %v354_v16 = vshrl.u32 %v1923_v21, %v345_v4  ;;  %v357_v18 = vshrl.u32 %v1924_v23, %v345_v4 }
 0x11a   :  { %v360_v20 = vshrl.u32 %v1925_v28, %v345_v4  ;;  %v346_v37 = vshrl.u32 %v1926_v30, %v345_v4  ;;  %vm364_vm4 = vcmp.lt.s32.totalorder %v343_v7, 3  ;;  %vm363_vm5 = vcmp.lt.s32.totalorder %v343_v7, 2 }
 0x11b   :  { %v349_v24 = vor.u32 %v348_v12, %v347_v9  ;;  %v352_v25 = vor.u32 %v351_v14, %v350_v11  ;;  %v355_v27 = vor.u32 %v354_v16, %v353_v15  ;;  %v358_v29 = vor.u32 %v357_v18, %v356_v17 }
 0x11c   :  { %v361_v31 = vor.u32 %v360_v20, %v359_v19 }
 0x11d   :  { %v367_v33 = vsel %vm365_vm3, %v355_v27, 2102212464  ;;  %v370_v34 = vsel %vm362_vm2, %v349_v24, %v352_v25  ;;  %v374_v36 = vsel %vm362_vm2, %v352_v25, %v355_v27  ;;  %v371_v38 = vsel %vm365_vm3, %v358_v29, 920167782 }
 0x11e   :  { %v375_v39 = vsel %vm365_vm3, %v361_v31, 1326507024  ;;  %v372_v40 = vsel %vm364_vm4, %v355_v27, %v371_v38  ;;  %v366_v43 = vsel %vm362_vm2, %v346_v37, %v349_v24  ;;  %v368_v44 = vsel %vm364_vm4, %v352_v25, %v367_v33 }
 0x11f   :  { %v376_v41 = vsel %vm364_vm4, %v358_v29, %v375_v39  ;;  %v373_v45 = vsel %vm363_vm5, %v370_v34, %v372_v40  ;;  %v369_v26 = vsel %vm363_vm5, %v366_v43, %v368_v44 }
 0x120   :  { %v377_v46 = vsel %vm363_vm5, %v374_v36, %v376_v41  ;;  %v2089_v49 = vmul.u32.u64.low %v378_v42, %v373_v45  ;;  %v2090_v50 = vmul.u32.u64.high %v378_v42, %v373_v45, %v2089_v49  ;;  %v385_v53 = vmul.u32 %v378_v42, %v369_v26  ;;  %v436_v45 = vld [vmem:[#allocation2 + $0x10] sm:$0xff] }
 0x121   :  { %v2086_v47 = vmul.u32.u64.low %v378_v42, %v377_v46  ;;  %v2087_v48 = vmul.u32.u64.high %v378_v42, %v377_v46, %v2086_v47 }
 0x122   :  { %v388_v52 = vadd.s32 1, %v2090_v50 }
 0x123   :  { %vm387_vm6 = vc.u32 %v2087_v48, %v2089_v49  ;;  %v386_v4 = vadd.s32 %v2089_v49, %v2087_v48 }
 0x124   :  { %v389_v54 = vsel %vm387_vm6, %v388_v52, %v2090_v50 }
 0x125   :  { %v390_v55 = vadd.s32 %v389_v54, %v385_v53 }
 0x127   :  { %v391_v56 = vadd.s32 536870912, %v390_v55 }
 0x129   :  { %v392_v57 = vshrl.u32 %v391_v56, 30 }
 0x12b   :  { %v393_v58 = vshll.u32 %v392_v57, 30  ;;  %v416_v24 = vsub.s32 4, %v392_v57 }
 0x12d   :  { %v394_v59 = vsub.s32 %v390_v55, %v393_v58  ;;  %v417_v27 = vsel %vm332_vm8, %v416_v24, %v392_v57 }
 0x12e   :  { %v419_v29 = vsel %vm331_vm9, 0, %v417_v27 }
 0x12f   :  { %v396_v60 = vsub.s32 0, %v394_v59  ;;  %v423_v31 = vand.u32 3, %v419_v29 }
 0x131   :  { %v1553_v61 = vmin.u32 %v396_v60, %v394_v59  ;;  %vm428_vm10 = vcmp.eq.s32.totalorder %v423_v31, 2  ;;  %vm425_vm11 = vcmp.eq.s32.totalorder %v423_v31, 0  ;;  %vm424_vm12 = vcmp.lt.s32.totalorder %v423_v31, 2 }
 0x133   :  { %v398_v62 = vclz %v1553_v61 }
 0x135   :  { %v1554_v2 = vadd.s32 4294967294, %v398_v62 }
 0x137   :  { %vm1555_vm7 = vcmp.lt.s32.totalorder %v1554_v2, 0 }
 0x138   :  { %v401_v3 = vsel %vm1555_vm7, 0, %v1554_v2 }
 0x139   :  { %v402_v5 = vsub.s32 32, %v401_v3  ;;  %v406_v7 = vsub.s32 4294967266, %v401_v3  ;;  %v403_v9 = vshll.u32 %v394_v59, %v401_v3 }
 0x13b   :  { %v404_v11 = vshrl.u32 %v386_v4, %v402_v5  ;;  %v407_v12 = vadd.s32 127, %v406_v7 }
 0x13d   :  { %v405_v14 = vor.u32 %v404_v11, %v403_v9  ;;  %v408_v15 = vshll.u32 %v407_v12, 23 }
 0x13f   :  { %v409_v16 = vor.u32 4788187, %v408_v15  ;;  %v412_v18 = vcvt.s32.f32 %v405_v14 }
 0x141   :  { %v410_v17 = vand.u32 2147483647, %v409_v16 }
 0x143   :  { %v413_v19 = vmul.f32 %v412_v18, %v410_v17 }
 0x145   :  { %v414_v20 = vxor.u32 2147483648, %v413_v19 }
 0x147   :  { %v415_v22 = vsel %vm332_vm8, %v414_v20, %v413_v19 }
 0x148   :  { %v418_v25 = vsel %vm331_vm9, %v2066_v13, %v415_v22 }
 0x149   :  { %1813 = vcosq.f32 %v418_v25 }
 0x14a   :  { %1815 = vsinq.f32 %v418_v25 }
 0x153   :  { %v1814_v33 = vpop.eup %1813 }
 0x154   :  { %v1816_v34 = vpop.eup %1815  ;;  %v429_v36 = vxor.u32 2147483648, %v1814_v33 }
 0x155   :  { %v426_v37 = vxor.u32 2147483648, %v1816_v34 }
 0x156   :  { %v430_v38 = vsel %vm428_vm10, %v429_v36, %v1816_v34 }
 0x157   :  { %v427_v39 = vsel %vm425_vm11, %v1814_v33, %v426_v37 }
 0x158   :  { %v431_v63 = vsel %vm424_vm12, %v427_v39, %v430_v38 }
 0x159   :  { %v432_v40 = vsel %vm422_vm13, nan, %v431_v63 }
 0x15a   :  { %v433_v41 = vmul.f32 %v2058_v51, %v432_v40 }
 0x1da   :  { %v324_v42 = vpop.f32.mrb[0].mxu1 }
 0x1db   :  { %v434_v43 = vadd.f32 %v433_v41, %v324_v42  ;;  %v1647_v44 = vpop.f32.mrb[1].mxu1 }
 0x1dd   :  { %v510_v46 = vmul.f32 %v2008_v10, %v434_v43  ;;  %1657 = vmatmul.mubr.msk.f32.vlgmr.msra.gmra.mrb[2].mxu0 %vm50_vm0, %v434_v43 }
 0x1de   :  { %1740 = vmatpush3.bf16.msra.mxu0 %v1986_v6  ;;  %1678 = vmatprep.mubr.msk.f32.mxu0 %vm1920_vm1, %v1921_v1 }
 0x1df   :  { %v2107_v47 = vadd.f32 %v510_v46, %v436_v45  ;;  %1741 = vmatprep.subr.bf16.mxu0 %v1919_v0 }
 0x1e1   :  { %v515_v13 = vand.u32 2139095040, %v2107_v47  ;;  %v512_v26 = vand.u32 2147483647, %v2107_v47  ;;  %vm514_vm7 = vcmp.lt.s32.totalorder %v2107_v47, 0  ;;  %vm604_vm12 = vweird.f32 %v2107_v47 }
 0x1e2   :  { %1743 = vmatpush3.bf16.msra.mxu0 %v1989_v8 }
 0x1e3   :  { %v516_v48 = vshrl.u32 %v515_v13, 23  ;;  %1750 = vmatprep.subr.bf16.mxu0 %v1919_v0  ;;  %v519_v55 = vand.u32 8388607, %v512_v26  ;;  %vm513_vm8 = vcmp.le.f32.partialorder %v512_v26, 0.7853982 }
 0x1e5   :  { %v1557_v49 = vadd.s32 4294967169, %v516_v48  ;;  %v520_v7 = vor.u32 8388608, %v519_v55 }
 0x1e7   :  { %v522_v50 = vadd.s32 1, %v1557_v49  ;;  %v560_v27 = vshll.u32 %v520_v7, 8 }
 0x1e9   :  { %vm523_vm14 = vcmp.gt.s32.totalorder %v522_v50, 0 }
 0x1ea   :  { %v524_v52 = vsel %vm523_vm14, %v522_v50, 0 }
 0x1eb   :  { %v526_v53 = vand.u32 31, %v524_v52  ;;  %v525_v56 = vshrl.u32 %v524_v52, 5 }
 0x1ed   :  { %v527_v54 = vsub.s32 32, %v526_v53  ;;  %v529_v57 = vshll.u32 %v1926_v30, %v526_v53  ;;  %v532_v58 = vshll.u32 %v1927_v32, %v526_v53  ;;  %v535_v61 = vshll.u32 %v1928_v35, %v526_v53 }
 0x1ee   :  { %v538_v2 = vshll.u32 %v1923_v21, %v526_v53  ;;  %v541_v4 = vshll.u32 %v1924_v23, %v526_v53  ;;  %vm544_vm15 = vcmp.lt.s32.totalorder %v525_v56, 1  ;;  %vm547_vm2 = vcmp.lt.s32.totalorder %v525_v56, 4 }
 0x1ef   :  { %v530_v59 = vshrl.u32 %v1927_v32, %v527_v54  ;;  %v533_v60 = vshrl.u32 %v1928_v35, %v527_v54  ;;  %v536_v62 = vshrl.u32 %v1923_v21, %v527_v54  ;;  %v539_v3 = vshrl.u32 %v1924_v23, %v527_v54 }
 0x1f0   :  { %v542_v5 = vshrl.u32 %v1925_v28, %v527_v54  ;;  %v528_v19 = vshrl.u32 %v1926_v30, %v527_v54  ;;  %vm546_vm3 = vcmp.lt.s32.totalorder %v525_v56, 3  ;;  %vm545_vm4 = vcmp.lt.s32.totalorder %v525_v56, 2 }
 0x1f1   :  { %v531_v9 = vor.u32 %v530_v59, %v529_v57  ;;  %v534_v11 = vor.u32 %v533_v60, %v532_v58  ;;  %v537_v12 = vor.u32 %v536_v62, %v535_v61  ;;  %v540_v14 = vor.u32 %v539_v3, %v538_v2 }
 0x1f2   :  { %v543_v15 = vor.u32 %v542_v5, %v541_v4 }
 0x1f3   :  { %v549_v16 = vsel %vm547_vm2, %v537_v12, 2102212464  ;;  %v552_v17 = vsel %vm544_vm15, %v531_v9, %v534_v11  ;;  %v556_v18 = vsel %vm544_vm15, %v534_v11, %v537_v12  ;;  %v553_v20 = vsel %vm547_vm2, %v540_v14, 920167782 }
 0x1f4   :  { %v557_v22 = vsel %vm547_vm2, %v543_v15, 1326507024  ;;  %v554_v24 = vsel %vm546_vm3, %v537_v12, %v553_v20  ;;  %v548_v29 = vsel %vm544_vm15, %v528_v19, %v531_v9  ;;  %v550_v31 = vsel %vm546_vm3, %v534_v11, %v549_v16 }
 0x1f5   :  { %v558_v25 = vsel %vm546_vm3, %v540_v14, %v557_v22  ;;  %v555_v33 = vsel %vm545_vm4, %v552_v17, %v554_v24  ;;  %v551_v63 = vsel %vm545_vm4, %v548_v29, %v550_v31 }
 0x1f6   :  { %v559_v34 = vsel %vm545_vm4, %v556_v18, %v558_v25  ;;  %v2130_v38 = vmul.u32.u64.low %v560_v27, %v555_v33  ;;  %v2131_v39 = vmul.u32.u64.high %v560_v27, %v555_v33, %v2130_v38  ;;  %v567_v41 = vmul.u32 %v560_v27, %v551_v63  ;;  %v618_v33 = vld [vmem:[#allocation2 + $0x18] sm:$0xff] }
 0x1f7   :  { %v2127_v36 = vmul.u32.u64.low %v560_v27, %v559_v34  ;;  %v2128_v37 = vmul.u32.u64.high %v560_v27, %v559_v34, %v2127_v36 }
 0x1f8   :  { %v570_v40 = vadd.s32 1, %v2131_v39 }
 0x1f9   :  { %vm569_vm5 = vc.u32 %v2128_v37, %v2130_v38  ;;  %v568_v54 = vadd.s32 %v2130_v38, %v2128_v37 }
 0x1fa   :  { %v571_v42 = vsel %vm569_vm5, %v570_v40, %v2131_v39 }
 0x1fb   :  { %v572_v43 = vadd.s32 %v571_v42, %v567_v41 }
 0x1fd   :  { %v573_v44 = vadd.s32 536870912, %v572_v43 }
 0x1ff   :  { %v574_v45 = vshrl.u32 %v573_v44, 30 }
 0x201   :  { %v575_v46 = vshll.u32 %v574_v45, 30  ;;  %v598_v9 = vsub.s32 4, %v574_v45 }
 0x203   :  { %v576_v13 = vsub.s32 %v572_v43, %v575_v46  ;;  %v599_v12 = vsel %vm514_vm7, %v598_v9, %v574_v45 }
 0x204   :  { %v601_v14 = vsel %vm513_vm8, 0, %v599_v12 }
 0x205   :  { %v578_v48 = vsub.s32 0, %v576_v13  ;;  %v605_v15 = vand.u32 3, %v601_v14 }
 0x207   :  { %v1558_v49 = vmin.u32 %v578_v48, %v576_v13  ;;  %vm610_vm9 = vcmp.eq.s32.totalorder %v605_v15, 2  ;;  %vm607_vm10 = vcmp.eq.s32.totalorder %v605_v15, 0  ;;  %vm606_vm11 = vcmp.lt.s32.totalorder %v605_v15, 2 }
 0x209   :  { %v580_v50 = vclz %v1558_v49 }
 0x20b   :  { %v1559_v52 = vadd.s32 4294967294, %v580_v50 }
 0x20d   :  { %vm1560_vm6 = vcmp.lt.s32.totalorder %v1559_v52, 0 }
 0x20e   :  { %v583_v53 = vsel %vm1560_vm6, 0, %v1559_v52 }
 0x20f   :  { %v584_v55 = vsub.s32 32, %v583_v53  ;;  %v588_v56 = vsub.s32 4294967266, %v583_v53  ;;  %v585_v57 = vshll.u32 %v576_v13, %v583_v53 }
 0x211   :  { %v586_v58 = vshrl.u32 %v568_v54, %v584_v55  ;;  %v589_v59 = vadd.s32 127, %v588_v56 }
 0x213   :  { %v587_v60 = vor.u32 %v586_v58, %v585_v57  ;;  %v590_v61 = vshll.u32 %v589_v59, 23 }
 0x215   :  { %v591_v62 = vor.u32 4788187, %v590_v61  ;;  %v594_v3 = vcvt.s32.f32 %v587_v60 }
 0x217   :  { %v592_v2 = vand.u32 2147483647, %v591_v62 }
 0x219   :  { %v595_v4 = vmul.f32 %v594_v3, %v592_v2 }
 0x21b   :  { %v596_v5 = vxor.u32 2147483648, %v595_v4 }
 0x21d   :  { %v597_v7 = vsel %vm514_vm7, %v596_v5, %v595_v4 }
 0x21e   :  { %v600_v11 = vsel %vm513_vm8, %v2107_v47, %v597_v7 }
 0x21f   :  { %1817 = vcosq.f32 %v600_v11 }
 0x220   :  { %1819 = vsinq.f32 %v600_v11 }
 0x229   :  { %v1818_v16 = vpop.eup %1817 }
 0x22a   :  { %v1820_v17 = vpop.eup %1819  ;;  %v611_v18 = vxor.u32 2147483648, %v1818_v16 }
 0x22b   :  { %v608_v19 = vxor.u32 2147483648, %v1820_v17 }
 0x22c   :  { %v612_v20 = vsel %vm610_vm9, %v611_v18, %v1820_v17 }
 0x22d   :  { %v609_v22 = vsel %vm607_vm10, %v1818_v16, %v608_v19 }
 0x22e   :  { %v613_v26 = vsel %vm606_vm11, %v609_v22, %v612_v20 }
 0x22f   :  { %v614_v24 = vsel %vm604_vm12, nan, %v613_v26 }
 0x230   :  { %v615_v25 = vmul.f32 %v2058_v51, %v614_v24 }
 0x2b0   :  { %v506_v27 = vpop.f32.mrb[2].mxu0 }
 0x2b1   :  { %v616_v29 = vadd.f32 %v615_v25, %v506_v27  ;;  %v1658_v31 = vpop.f32.mrb[3].mxu0 }
 0x2b3   :  { %v692_v34 = vmul.f32 %v2008_v10, %v616_v29  ;;  %1668 = vmatmul.mubr.msk.f32.vlgmr.msra.gmra.mrb[2].mxu1 %vm50_vm0, %v616_v29 }
 0x2b4   :  { %1746 = vmatpush3.bf16.msra.mxu1 %v1986_v6  ;;  %1689 = vmatprep.mubr.msk.f32.mxu1 %vm1920_vm1, %v1921_v1 }
 0x2b5   :  { %v2148_v36 = vadd.f32 %v692_v34, %v618_v33  ;;  %1747 = vmatprep.subr.bf16.mxu1 %v1919_v0 }
 0x2b7   :  { %v697_v47 = vand.u32 2139095040, %v2148_v36  ;;  %v694_v63 = vand.u32 2147483647, %v2148_v36  ;;  %vm696_vm6 = vcmp.lt.s32.totalorder %v2148_v36, 0  ;;  %vm786_vm11 = vweird.f32 %v2148_v36 }
 0x2b8   :  { %1749 = vmatpush3.bf16.msra.mxu1 %v1989_v8 }
 0x2b9   :  { %v698_v37 = vshrl.u32 %v697_v47, 23  ;;  %1756 = vmatprep.subr.bf16.mxu1 %v1919_v0  ;;  %v701_v43 = vand.u32 8388607, %v694_v63  ;;  %vm695_vm7 = vcmp.le.f32.partialorder %v694_v63, 0.7853982 }
 0x2bb   :  { %v1562_v38 = vadd.s32 4294967169, %v698_v37  ;;  %v702_v56 = vor.u32 8388608, %v701_v43 }
 0x2bd   :  { %v704_v39 = vadd.s32 1, %v1562_v38  ;;  %v742_v12 = vshll.u32 %v702_v56, 8 }
 0x2bf   :  { %vm705_vm13 = vcmp.gt.s32.totalorder %v704_v39, 0 }
 0x2c0   :  { %v706_v40 = vsel %vm705_vm13, %v704_v39, 0 }
 0x2c1   :  { %v708_v41 = vand.u32 31, %v706_v40  ;;  %v707_v44 = vshrl.u32 %v706_v40, 5 }
 0x2c3   :  { %v709_v42 = vsub.s32 32, %v708_v41  ;;  %v711_v45 = vshll.u32 %v1926_v30, %v708_v41  ;;  %v714_v46 = vshll.u32 %v1927_v32, %v708_v41  ;;  %v717_v49 = vshll.u32 %v1928_v35, %v708_v41 }
 0x2c4   :  { %v720_v52 = vshll.u32 %v1923_v21, %v708_v41  ;;  %v723_v54 = vshll.u32 %v1924_v23, %v708_v41  ;;  %vm726_vm14 = vcmp.lt.s32.totalorder %v707_v44, 1  ;;  %vm729_vm15 = vcmp.lt.s32.totalorder %v707_v44, 4 }
 0x2c5   :  { %v712_v13 = vshrl.u32 %v1927_v32, %v709_v42  ;;  %v715_v48 = vshrl.u32 %v1928_v35, %v709_v42  ;;  %v718_v50 = vshrl.u32 %v1923_v21, %v709_v42  ;;  %v721_v53 = vshrl.u32 %v1924_v23, %v709_v42 }
 0x2c6   :  { %v724_v55 = vshrl.u32 %v1925_v28, %v709_v42  ;;  %v710_v4 = vshrl.u32 %v1926_v30, %v709_v42  ;;  %vm728_vm2 = vcmp.lt.s32.totalorder %v707_v44, 3  ;;  %vm727_vm3 = vcmp.lt.s32.totalorder %v707_v44, 2 }
 0x2c7   :  { %v713_v57 = vor.u32 %v712_v13, %v711_v45  ;;  %v716_v58 = vor.u32 %v715_v48, %v714_v46  ;;  %v719_v59 = vor.u32 %v718_v50, %v717_v49  ;;  %v722_v60 = vor.u32 %v721_v53, %v720_v52 }
 0x2c8   :  { %v725_v61 = vor.u32 %v724_v55, %v723_v54 }
 0x2c9   :  { %v731_v62 = vsel %vm729_vm15, %v719_v59, 2102212464  ;;  %v734_v2 = vsel %vm726_vm14, %v713_v57, %v716_v58  ;;  %v738_v3 = vsel %vm726_vm14, %v716_v58, %v719_v59  ;;  %v735_v5 = vsel %vm729_vm15, %v722_v60, 920167782 }
 0x2ca   :  { %v739_v7 = vsel %vm729_vm15, %v725_v61, 1326507024  ;;  %v736_v9 = vsel %vm728_vm2, %v719_v59, %v735_v5  ;;  %v730_v14 = vsel %vm726_vm14, %v710_v4, %v713_v57  ;;  %v732_v15 = vsel %vm728_vm2, %v716_v58, %v731_v62 }
 0x2cb   :  { %v740_v11 = vsel %vm728_vm2, %v722_v60, %v739_v7  ;;  %v737_v16 = vsel %vm727_vm3, %v734_v2, %v736_v9  ;;  %v733_v26 = vsel %vm727_vm3, %v730_v14, %v732_v15 }
 0x2cc   :  { %v741_v17 = vsel %vm727_vm3, %v738_v3, %v740_v11  ;;  %v2171_v20 = vmul.u32.u64.low %v742_v12, %v737_v16  ;;  %v2172_v22 = vmul.u32.u64.high %v742_v12, %v737_v16, %v2171_v20  ;;  %v749_v25 = vmul.u32 %v742_v12, %v733_v26  ;;  %v800_v16 = vld [vmem:[#allocation2 + $0x20] sm:$0xff] }
 0x2cd   :  { %v2168_v18 = vmul.u32.u64.low %v742_v12, %v741_v17  ;;  %v2169_v19 = vmul.u32.u64.high %v742_v12, %v741_v17, %v2168_v18 }
 0x2ce   :  { %v752_v24 = vadd.s32 1, %v2172_v22 }
 0x2cf   :  { %vm751_vm4 = vc.u32 %v2169_v19, %v2171_v20  ;;  %v750_v42 = vadd.s32 %v2171_v20, %v2169_v19 }
 0x2d0   :  { %v753_v27 = vsel %vm751_vm4, %v752_v24, %v2172_v22 }
 0x2d1   :  { %v754_v29 = vadd.s32 %v753_v27, %v749_v25 }
 0x2d3   :  { %v755_v31 = vadd.s32 536870912, %v754_v29 }
 0x2d5   :  { %v756_v33 = vshrl.u32 %v755_v31, 30 }
 0x2d7   :  { %v757_v34 = vshll.u32 %v756_v33, 30  ;;  %v780_v57 = vsub.s32 4, %v756_v33 }
 0x2d9   :  { %v758_v47 = vsub.s32 %v754_v29, %v757_v34  ;;  %v781_v59 = vsel %vm696_vm6, %v780_v57, %v756_v33 }
 0x2da   :  { %v783_v60 = vsel %vm695_vm7, 0, %v781_v59 }
 0x2db   :  { %v760_v37 = vsub.s32 0, %v758_v47  ;;  %v787_v61 = vand.u32 3, %v783_v60 }
 0x2dd   :  { %v1563_v38 = vmin.u32 %v760_v37, %v758_v47  ;;  %vm792_vm8 = vcmp.eq.s32.totalorder %v787_v61, 2  ;;  %vm789_vm9 = vcmp.eq.s32.totalorder %v787_v61, 0  ;;  %vm788_vm10 = vcmp.lt.s32.totalorder %v787_v61, 2 }
 0x2df   :  { %v762_v39 = vclz %v1563_v38 }
 0x2e1   :  { %v1564_v40 = vadd.s32 4294967294, %v762_v39 }
 0x2e3   :  { %vm1565_vm5 = vcmp.lt.s32.totalorder %v1564_v40, 0 }
 0x2e4   :  { %v765_v41 = vsel %vm1565_vm5, 0, %v1564_v40 }
 0x2e5   :  { %v766_v43 = vsub.s32 32, %v765_v41  ;;  %v770_v44 = vsub.s32 4294967266, %v765_v41  ;;  %v767_v45 = vshll.u32 %v758_v47, %v765_v41 }
 0x2e7   :  { %v768_v46 = vshrl.u32 %v750_v42, %v766_v43  ;;  %v771_v13 = vadd.s32 127, %v770_v44 }
 0x2e9   :  { %v769_v48 = vor.u32 %v768_v46, %v767_v45  ;;  %v772_v49 = vshll.u32 %v771_v13, 23 }
 0x2eb   :  { %v773_v50 = vor.u32 4788187, %v772_v49  ;;  %v776_v53 = vcvt.s32.f32 %v769_v48 }
 0x2ed   :  { %v774_v52 = vand.u32 2147483647, %v773_v50 }
 0x2ef   :  { %v777_v54 = vmul.f32 %v776_v53, %v774_v52 }
 0x2f1   :  { %v778_v55 = vxor.u32 2147483648, %v777_v54 }
 0x2f3   :  { %v779_v56 = vsel %vm696_vm6, %v778_v55, %v777_v54 }
 0x2f4   :  { %v782_v58 = vsel %vm695_vm7, %v2148_v36, %v779_v56 }
 0x2f5   :  { %1821 = vcosq.f32 %v782_v58 }
 0x2f6   :  { %1823 = vsinq.f32 %v782_v58 }
 0x2ff   :  { %v1822_v62 = vpop.eup %1821 }
 0x300   :  { %v1824_v2 = vpop.eup %1823  ;;  %v793_v3 = vxor.u32 2147483648, %v1822_v62 }
 0x301   :  { %v790_v4 = vxor.u32 2147483648, %v1824_v2 }
 0x302   :  { %v794_v5 = vsel %vm792_vm8, %v793_v3, %v1824_v2 }
 0x303   :  { %v791_v7 = vsel %vm789_vm9, %v1822_v62, %v790_v4 }
 0x304   :  { %v795_v63 = vsel %vm788_vm10, %v791_v7, %v794_v5 }
 0x305   :  { %v796_v9 = vsel %vm786_vm11, nan, %v795_v63 }
 0x306   :  { %v797_v11 = vmul.f32 %v2058_v51, %v796_v9 }
 0x386   :  { %v688_v12 = vpop.f32.mrb[2].mxu1 }
 0x387   :  { %v798_v14 = vadd.f32 %v797_v11, %v688_v12  ;;  %v1669_v15 = vpop.f32.mrb[3].mxu1 }
 0x389   :  { %v874_v17 = vmul.f32 %v2008_v10, %v798_v14  ;;  %1679 = vmatmul.mubr.msk.f32.vlgmr.msra.gmra.mrb[4].mxu0 %vm50_vm0, %v798_v14 }
 0x38a   :  { %1752 = vmatpush3.bf16.msra.mxu0 %v1986_v6  ;;  %1700 = vmatprep.mubr.msk.f32.mxu0 %vm1920_vm1, %v1921_v1 }
 0x38b   :  { %v2189_v18 = vadd.f32 %v874_v17, %v800_v16  ;;  %1753 = vmatprep.subr.bf16.mxu0 %v1919_v0 }
 0x38d   :  { %v879_v36 = vand.u32 2139095040, %v2189_v18  ;;  %v876_v10 = vand.u32 2147483647, %v2189_v18  ;;  %vm878_vm5 = vcmp.lt.s32.totalorder %v2189_v18, 0  ;;  %vm968_vm10 = vweird.f32 %v2189_v18 }
 0x38e   :  { %1755 = vmatpush3.bf16.msra.mxu0 %v1989_v8 }
 0x38f   :  { %v880_v19 = vshrl.u32 %v879_v36, 23  ;;  %v883_v27 = vand.u32 8388607, %v876_v10  ;;  %vm877_vm6 = vcmp.le.f32.partialorder %v876_v10, 0.7853982 }
 0x391   :  { %v1567_v20 = vadd.s32 4294967169, %v880_v19  ;;  %v884_v43 = vor.u32 8388608, %v883_v27 }
 0x393   :  { %v886_v22 = vadd.s32 1, %v1567_v20  ;;  %v924_v58 = vshll.u32 %v884_v43, 8 }
 0x395   :  { %vm887_vm12 = vcmp.gt.s32.totalorder %v886_v22, 0 }
 0x396   :  { %v888_v26 = vsel %vm887_vm12, %v886_v22, 0 }
 0x397   :  { %v890_v24 = vand.u32 31, %v888_v26  ;;  %v889_v29 = vshrl.u32 %v888_v26, 5 }
 0x399   :  { %v891_v25 = vsub.s32 32, %v890_v24  ;;  %v893_v31 = vshll.u32 %v1926_v30, %v890_v24  ;;  %v896_v33 = vshll.u32 %v1927_v32, %v890_v24  ;;  %v899_v37 = vshll.u32 %v1928_v35, %v890_v24 }
 0x39a   :  { %v902_v39 = vshll.u32 %v1923_v21, %v890_v24  ;;  %v905_v41 = vshll.u32 %v1924_v23, %v890_v24  ;;  %vm908_vm13 = vcmp.lt.s32.totalorder %v889_v29, 1  ;;  %vm911_vm14 = vcmp.lt.s32.totalorder %v889_v29, 4 }
 0x39b   :  { %v894_v34 = vshrl.u32 %v1927_v32, %v891_v25  ;;  %v897_v47 = vshrl.u32 %v1928_v35, %v891_v25  ;;  %v900_v38 = vshrl.u32 %v1923_v21, %v891_v25  ;;  %v903_v40 = vshrl.u32 %v1924_v23, %v891_v25 }
 0x39c   :  { %v906_v42 = vshrl.u32 %v1925_v28, %v891_v25  ;;  %v892_v53 = vshrl.u32 %v1926_v30, %v891_v25  ;;  %vm910_vm15 = vcmp.lt.s32.totalorder %v889_v29, 3  ;;  %vm909_vm2 = vcmp.lt.s32.totalorder %v889_v29, 2 }
 0x39d   :  { %v895_v44 = vor.u32 %v894_v34, %v893_v31  ;;  %v898_v45 = vor.u32 %v897_v47, %v896_v33  ;;  %v901_v46 = vor.u32 %v900_v38, %v899_v37  ;;  %v904_v13 = vor.u32 %v903_v40, %v902_v39 }
 0x39e   :  { %v907_v48 = vor.u32 %v906_v42, %v905_v41 }
 0x39f   :  { %v913_v49 = vsel %vm911_vm14, %v901_v46, 2102212464  ;;  %v916_v50 = vsel %vm908_vm13, %v895_v44, %v898_v45  ;;  %v920_v52 = vsel %vm908_vm13, %v898_v45, %v901_v46  ;;  %v917_v54 = vsel %vm911_vm14, %v904_v13, 920167782 }
 0x3a0   :  { %v921_v55 = vsel %vm911_vm14, %v907_v48, 1326507024  ;;  %v918_v56 = vsel %vm910_vm15, %v901_v46, %v917_v54  ;;  %v912_v59 = vsel %vm908_vm13, %v892_v53, %v895_v44  ;;  %v914_v60 = vsel %vm910_vm15, %v898_v45, %v913_v49 }
 0x3a1   :  { %v922_v57 = vsel %vm910_vm15, %v904_v13, %v921_v55  ;;  %v919_v61 = vsel %vm909_vm2, %v916_v50, %v918_v56  ;;  %v915_v7 = vsel %vm909_vm2, %v912_v59, %v914_v60  ;;  %v982_v60 = vld [vmem:[#allocation2 + $0x28] sm:$0xff] }
 0x3a2   :  { %v923_v62 = vsel %vm909_vm2, %v920_v52, %v922_v57  ;;  %v2211_v4 = vmul.u32.u64.low %v924_v58, %v919_v61  ;;  %v2212_v5 = vmul.u32.u64.high %v924_v58, %v919_v61, %v2211_v4  ;;  %v931_v9 = vmul.u32 %v924_v58, %v915_v7  ;;  %v2227_v61 = vld [vmem:[%s2360_s3] ss:$0 sm:$0xff] }
 0x3a3   :  { %v2208_v2 = vmul.u32.u64.low %v924_v58, %v923_v62  ;;  %v2209_v3 = vmul.u32.u64.high %v924_v58, %v923_v62, %v2208_v2 }
 0x3a4   :  { %v934_v63 = vadd.s32 1, %v2212_v5 }
 0x3a5   :  { %vm933_vm3 = vc.u32 %v2209_v3, %v2211_v4  ;;  %v932_v24 = vadd.s32 %v2211_v4, %v2209_v3 }
 0x3a6   :  { %v935_v11 = vsel %vm933_vm3, %v934_v63, %v2212_v5 }
 0x3a7   :  { %v936_v12 = vadd.s32 %v935_v11, %v931_v9 }
 0x3a9   :  { %v937_v14 = vadd.s32 536870912, %v936_v12 }
 0x3ab   :  { %v938_v15 = vshrl.u32 %v937_v14, 30 }
 0x3ad   :  { %v939_v16 = vshll.u32 %v938_v15, 30  ;;  %v962_v43 = vsub.s32 4, %v938_v15 }
 0x3af   :  { %v940_v17 = vsub.s32 %v936_v12, %v939_v16  ;;  %v963_v45 = vsel %vm878_vm5, %v962_v43, %v938_v15 }
 0x3b0   :  { %v965_v46 = vsel %vm877_vm6, 0, %v963_v45 }
 0x3b1   :  { %v942_v36 = vsub.s32 0, %v940_v17  ;;  %v969_v13 = vand.u32 3, %v965_v46 }
 0x3b3   :  { %v1568_v19 = vmin.u32 %v942_v36, %v940_v17  ;;  %vm974_vm7 = vcmp.eq.s32.totalorder %v969_v13, 2  ;;  %vm971_vm8 = vcmp.eq.s32.totalorder %v969_v13, 0  ;;  %vm970_vm9 = vcmp.lt.s32.totalorder %v969_v13, 2 }
 0x3b5   :  { %v944_v20 = vclz %v1568_v19 }
 0x3b7   :  { %v1569_v22 = vadd.s32 4294967294, %v944_v20 }
 0x3b9   :  { %vm1570_vm4 = vcmp.lt.s32.totalorder %v1569_v22, 0 }
 0x3ba   :  { %v947_v26 = vsel %vm1570_vm4, 0, %v1569_v22 }
 0x3bb   :  { %v948_v25 = vsub.s32 32, %v947_v26  ;;  %v952_v27 = vsub.s32 4294967266, %v947_v26  ;;  %v949_v29 = vshll.u32 %v940_v17, %v947_v26 }
 0x3bd   :  { %v950_v31 = vshrl.u32 %v932_v24, %v948_v25  ;;  %v953_v33 = vadd.s32 127, %v952_v27 }
 0x3bf   :  { %v951_v34 = vor.u32 %v950_v31, %v949_v29  ;;  %v954_v47 = vshll.u32 %v953_v33, 23 }
 0x3c1   :  { %v955_v37 = vor.u32 4788187, %v954_v47  ;;  %v958_v39 = vcvt.s32.f32 %v951_v34 }
 0x3c3   :  { %v956_v38 = vand.u32 2147483647, %v955_v37 }
 0x3c5   :  { %v959_v40 = vmul.f32 %v958_v39, %v956_v38 }
 0x3c7   :  { %v960_v41 = vxor.u32 2147483648, %v959_v40 }
 0x3c9   :  { %v961_v42 = vsel %vm878_vm5, %v960_v41, %v959_v40 }
 0x3ca   :  { %v964_v44 = vsel %vm877_vm6, %v2189_v18, %v961_v42 }
 0x3cb   :  { %1825 = vcosq.f32 %v964_v44 }
 0x3cc   :  { %1827 = vsinq.f32 %v964_v44 }
 0x3d5   :  { %v1826_v48 = vpop.eup %1825 }
 0x3d6   :  { %v1828_v49 = vpop.eup %1827  ;;  %v975_v50 = vxor.u32 2147483648, %v1826_v48 }
 0x3d7   :  { %v972_v52 = vxor.u32 2147483648, %v1828_v49 }
 0x3d8   :  { %v976_v53 = vsel %vm974_vm7, %v975_v50, %v1828_v49 }
 0x3d9   :  { %v973_v54 = vsel %vm971_vm8, %v1826_v48, %v972_v52 }
 0x3da   :  { %v977_v10 = vsel %vm970_vm9, %v973_v54, %v976_v53 }
 0x3db   :  { %v978_v55 = vsel %vm968_vm10, nan, %v977_v10 }
 0x3dc   :  { %v979_v56 = vmul.f32 %v2058_v51, %v978_v55 }
 0x45c   :  { %v870_v57 = vpop.f32.mrb[4].mxu0 }
 0x45d   :  { %v980_v58 = vadd.f32 %v979_v56, %v870_v57  ;;  %v1680_v59 = vpop.f32.mrb[5].mxu0 }
 0x45f   :  { %v1056_v62 = vmul.f32 %v2227_v61, %v980_v58  ;;  %1690 = vmatmul.mubr.msk.f32.vlgmr.msra.gmra.mrb[4].mxu1 %vm50_vm0, %v980_v58 }
 0x460   :  { %1758 = vmatpush3.bf16.msra.mxu1 %v1986_v6  ;;  %1711 = vmatprep.mubr.msk.f32.mxu1 %vm1920_vm1, %v1921_v1 }
 0x461   :  { %v2234_v18 = vadd.f32 %v1056_v62, %v982_v60  ;;  %1759 = vmatprep.subr.bf16.mxu1 %v1919_v0 }
 0x463   :  { %v1061_v51 = vand.u32 2139095040, %v2234_v18  ;;  %v1058_v5 = vand.u32 2147483647, %v2234_v18  ;;  %vm1060_vm3 = vcmp.lt.s32.totalorder %v2234_v18, 0  ;;  %vm1150_vm8 = vweird.f32 %v2234_v18 }
 0x464   :  { %1761 = vmatpush3.bf16.msra.mxu1 %v1989_v8 }
 0x465   :  { %v1062_v2 = vshrl.u32 %v1061_v51, 23  ;;  %v1065_v1 = vand.u32 8388607, %v1058_v5  ;;  %vm1059_vm4 = vcmp.le.f32.partialorder %v1058_v5, 0.7853982 }
 0x467   :  { %v1572_v3 = vadd.s32 4294967169, %v1062_v2  ;;  %v1066_v20 = vor.u32 8388608, %v1065_v1 }
 0x469   :  { %v1068_v4 = vadd.s32 1, %v1572_v3  ;;  %v1106_v40 = vshll.u32 %v1066_v20, 8 }
 0x46b   :  { %vm1069_vm11 = vcmp.gt.s32.totalorder %v1068_v4, 0 }
 0x46c   :  { %v1070_v7 = vsel %vm1069_vm11, %v1068_v4, 0 }
 0x46d   :  { %v1072_v63 = vand.u32 31, %v1070_v7  ;;  %v1071_v9 = vshrl.u32 %v1070_v7, 5 }
 0x46f   :  { %v1073_v6 = vsub.s32 32, %v1072_v63  ;;  %v1075_v11 = vshll.u32 %v1926_v30, %v1072_v63  ;;  %v1078_v0 = vshll.u32 %v1927_v32, %v1072_v63  ;;  %v1081_v14 = vshll.u32 %v1928_v35, %v1072_v63 }
 0x470   :  { %v1084_v16 = vshll.u32 %v1923_v21, %v1072_v63  ;;  %v1087_v36 = vshll.u32 %v1924_v23, %v1072_v63  ;;  %vm1090_vm1 = vcmp.lt.s32.totalorder %v1071_v9, 1  ;;  %vm1093_vm12 = vcmp.lt.s32.totalorder %v1071_v9, 4 }
 0x471   :  { %v1076_v12 = vshrl.u32 %v1927_v32, %v1073_v6  ;;  %v1079_v8 = vshrl.u32 %v1928_v35, %v1073_v6  ;;  %v1082_v15 = vshrl.u32 %v1923_v21, %v1073_v6  ;;  %v1085_v17 = vshrl.u32 %v1924_v23, %v1073_v6 }
 0x472   :  { %v1088_v19 = vshrl.u32 %v1925_v28, %v1073_v6  ;;  %v1074_v34 = vshrl.u32 %v1926_v30, %v1073_v6  ;;  %vm1092_vm13 = vcmp.lt.s32.totalorder %v1071_v9, 3  ;;  %vm1091_vm14 = vcmp.lt.s32.totalorder %v1071_v9, 2 }
 0x473   :  { %v1077_v22 = vor.u32 %v1076_v12, %v1075_v11  ;;  %v1080_v26 = vor.u32 %v1079_v8, %v1078_v0  ;;  %v1083_v24 = vor.u32 %v1082_v15, %v1081_v14  ;;  %v1086_v25 = vor.u32 %v1085_v17, %v1084_v16 }
 0x474   :  { %v1089_v27 = vor.u32 %v1088_v19, %v1087_v36 }
 0x475   :  { %v1095_v29 = vsel %vm1093_vm12, %v1083_v24, 2102212464  ;;  %v1098_v31 = vsel %vm1090_vm1, %v1077_v22, %v1080_v26  ;;  %v1102_v33 = vsel %vm1090_vm1, %v1080_v26, %v1083_v24  ;;  %v1099_v47 = vsel %vm1093_vm12, %v1086_v25, 920167782 }
 0x476   :  { %v1103_v37 = vsel %vm1093_vm12, %v1089_v27, 1326507024  ;;  %v1100_v38 = vsel %vm1092_vm13, %v1083_v24, %v1099_v47  ;;  %v1094_v41 = vsel %vm1090_vm1, %v1074_v34, %v1077_v22  ;;  %v1096_v42 = vsel %vm1092_vm13, %v1080_v26, %v1095_v29 }
 0x477   :  { %v1104_v39 = vsel %vm1092_vm13, %v1086_v25, %v1103_v37  ;;  %v1101_v43 = vsel %vm1091_vm14, %v1098_v31, %v1100_v38  ;;  %v1097_v49 = vsel %vm1091_vm14, %v1094_v41, %v1096_v42 }
 0x478   :  { %v1105_v44 = vsel %vm1091_vm14, %v1102_v33, %v1104_v39  ;;  %v2256_v13 = vmul.u32.u64.low %v1106_v40, %v1101_v43  ;;  %v2257_v48 = vmul.u32.u64.high %v1106_v40, %v1101_v43, %v2256_v13  ;;  %v1113_v52 = vmul.u32 %v1106_v40, %v1097_v49  ;;  %v2271_v33 = vld [vmem:[%s2359_s2] ss:$0 sm:$0xff]  ;;  %v1164_v39 = vld [vmem:[#allocation2 + $0x30] sm:$0xff]  ;;  %s1929_s2 = smov [#allocation7]  }
 0x479   :  { %v2253_v45 = vmul.u32.u64.low %v1106_v40, %v1105_v44  ;;  %v2254_v46 = vmul.u32.u64.high %v1106_v40, %v1105_v44, %v2253_v45  ;;  %s1534_s20 = sshll.u32 %s1929_s2, 4  ;;  %s1535_s20 = int_to_ptr.vmem [resolvable:$true] %s1534_s20 }
 0x47a   :  { %v1116_v50 = vadd.s32 1, %v2257_v48  ;;  %s1887_s21 = scalar_lea.vmem %s1535_s20, 128  ;;  %p1892_p3 = scmp.lt.s32.totalorder %s1535_s20, %s1535_s20 }
 0x47b   :  { %vm1115_vm15 = vc.u32 %v2254_v46, %v2256_v13  ;;  %v1114_v2 = vadd.s32 %v2256_v13, %v2254_v46  ;;  %p1888_p2 = scmp.ne.s32.totalorder %s1535_s20, %s1887_s21  ;;  %p1893_p4 = scmp.lt.s32.totalorder %s1887_s21, %s1887_s21 }
 0x47c   :  { %v1117_v53 = vsel %vm1115_vm15, %v1116_v50, %v2257_v48 }
 0x47d   :  { %v1118_v54 = vadd.s32 %v1117_v53, %v1113_v52  ;;  %p1894_p5 = por %p1893_p4, %p1892_p3 }
 0x47f   :  { %v1119_v10 = vadd.s32 536870912, %v1118_v54  ;;  %p1895_p6 = pnand %p1894_p5, %p1888_p2 }
 0x481   :  { %v1120_v55 = vshrl.u32 %v1119_v10, 30 }
 0x483   :  { %v1121_v56 = vshll.u32 %v1120_v55, 30  ;;  %v1144_v16 = vsub.s32 4, %v1120_v55 }
 0x485   :  { %v1122_v57 = vsub.s32 %v1118_v54, %v1121_v56  ;;  %v1145_v36 = vsel %vm1060_vm3, %v1144_v16, %v1120_v55 }
 0x486   :  { %v1147_v19 = vsel %vm1059_vm4, 0, %v1145_v36 }
 0x487   :  { %v1124_v58 = vsub.s32 0, %v1122_v57  ;;  %v1151_v20 = vand.u32 3, %v1147_v19 }
 0x489   :  { %v1573_v59 = vmin.u32 %v1124_v58, %v1122_v57  ;;  %vm1156_vm5 = vcmp.eq.s32.totalorder %v1151_v20, 2  ;;  %vm1153_vm6 = vcmp.eq.s32.totalorder %v1151_v20, 0  ;;  %vm1152_vm7 = vcmp.lt.s32.totalorder %v1151_v20, 2 }
 0x48b   :  { %v1126_v60 = vclz %v1573_v59 }
 0x48d   :  { %v1574_v62 = vadd.s32 4294967294, %v1126_v60 }
 0x48f   :  { %vm1575_vm2 = vcmp.lt.s32.totalorder %v1574_v62, 0 }
 0x490   :  { %v1129_v51 = vsel %vm1575_vm2, 0, %v1574_v62 }
 0x491   :  { %v1130_v3 = vsub.s32 32, %v1129_v51  ;;  %v1134_v4 = vsub.s32 4294967266, %v1129_v51  ;;  %v1131_v7 = vshll.u32 %v1122_v57, %v1129_v51 }
 0x493   :  { %v1132_v63 = vshrl.u32 %v1114_v2, %v1130_v3  ;;  %v1135_v6 = vadd.s32 127, %v1134_v4 }
 0x495   :  { %v1133_v1 = vor.u32 %v1132_v63, %v1131_v7  ;;  %v1136_v9 = vshll.u32 %v1135_v6, 23 }
 0x497   :  { %v1137_v11 = vor.u32 4788187, %v1136_v9  ;;  %v1140_v12 = vcvt.s32.f32 %v1133_v1 }
 0x499   :  { %v1138_v0 = vand.u32 2147483647, %v1137_v11 }
 0x49b   :  { %v1141_v8 = vmul.f32 %v1140_v12, %v1138_v0 }
 0x49d   :  { %v1142_v14 = vxor.u32 2147483648, %v1141_v8 }
 0x49f   :  { %v1143_v15 = vsel %vm1060_vm3, %v1142_v14, %v1141_v8 }
 0x4a0   :  { %v1146_v17 = vsel %vm1059_vm4, %v2234_v18, %v1143_v15 }
 0x4a1   :  { %1829 = vcosq.f32 %v1146_v17 }
 0x4a2   :  { %1831 = vsinq.f32 %v1146_v17 }
 0x4ab   :  { %v1830_v22 = vpop.eup %1829 }
 0x4ac   :  { %v1832_v26 = vpop.eup %1831  ;;  %v1157_v24 = vxor.u32 2147483648, %v1830_v22 }
 0x4ad   :  { %v1154_v25 = vxor.u32 2147483648, %v1832_v26 }
 0x4ae   :  { %v1158_v27 = vsel %vm1156_vm5, %v1157_v24, %v1832_v26 }
 0x4af   :  { %v1155_v29 = vsel %vm1153_vm6, %v1830_v22, %v1154_v25 }
 0x4b0   :  { %v1159_v5 = vsel %vm1152_vm7, %v1155_v29, %v1158_v27 }
 0x4b1   :  { %v1160_v31 = vsel %vm1150_vm8, nan, %v1159_v5 }
 0x4b2   :  { %v1161_v34 = vmul.f32 %v2271_v33, %v1160_v31 }
 0x532   :  { %v1052_v47 = vpop.f32.mrb[4].mxu1 }
 0x533   :  { %v1162_v37 = vadd.f32 %v1161_v34, %v1052_v47  ;;  %v1691_v38 = vpop.f32.mrb[5].mxu1 }
 0x535   :  { %v1238_v40 = vmul.f32 %v2227_v61, %v1162_v37  ;;  %1701 = vmatmul.mubr.msk.f32.vlgmr.msra.gmra.mrb[6].mxu0 %vm50_vm0, %v1162_v37 }
 0x537   :  { %v2276_v41 = vadd.f32 %v1238_v40, %v1164_v39 }
 0x539   :  { %v1243_v18 = vand.u32 2139095040, %v2276_v41  ;;  %v1240_v45 = vand.u32 2147483647, %v2276_v41  ;;  %vm1242_vm15 = vcmp.lt.s32.totalorder %v2276_v41, 0  ;;  %vm1332_vm6 = vweird.f32 %v2276_v41 }
 0x53b   :  { %v1244_v42 = vshrl.u32 %v1243_v18, 23  ;;  %v1247_v49 = vand.u32 8388607, %v1240_v45  ;;  %vm1241_vm2 = vcmp.le.f32.partialorder %v1240_v45, 0.7853982 }
 0x53d   :  { %v1577_v43 = vadd.s32 4294967169, %v1244_v42  ;;  %v1248_v62 = vor.u32 8388608, %v1247_v49 }
 0x53f   :  { %v1250_v44 = vadd.s32 1, %v1577_v43  ;;  %v1288_v14 = vshll.u32 %v1248_v62, 8 }
 0x541   :  { %vm1251_vm9 = vcmp.gt.s32.totalorder %v1250_v44, 0 }
 0x542   :  { %v1252_v46 = vsel %vm1251_vm9, %v1250_v44, 0 }
 0x543   :  { %v1254_v13 = vand.u32 31, %v1252_v46  ;;  %v1253_v50 = vshrl.u32 %v1252_v46, 5 }
 0x545   :  { %v1255_v48 = vsub.s32 32, %v1254_v13  ;;  %v1257_v52 = vshll.u32 %v1926_v30, %v1254_v13  ;;  %v1260_v53 = vshll.u32 %v1927_v32, %v1254_v13  ;;  %v1263_v55 = vshll.u32 %v1928_v35, %v1254_v13 }
 0x546   :  { %v1266_v57 = vshll.u32 %v1923_v21, %v1254_v13  ;;  %v1269_v59 = vshll.u32 %v1924_v23, %v1254_v13  ;;  %vm1272_vm10 = vcmp.lt.s32.totalorder %v1253_v50, 1  ;;  %vm1275_vm11 = vcmp.lt.s32.totalorder %v1253_v50, 4 }
 0x547   :  { %v1258_v54 = vshrl.u32 %v1927_v32, %v1255_v48  ;;  %v1261_v10 = vshrl.u32 %v1928_v35, %v1255_v48  ;;  %v1264_v56 = vshrl.u32 %v1923_v21, %v1255_v48  ;;  %v1267_v58 = vshrl.u32 %v1924_v23, %v1255_v48 }
 0x548   :  { %v1270_v60 = vshrl.u32 %v1925_v28, %v1255_v48  ;;  %v1256_v9 = vshrl.u32 %v1926_v30, %v1255_v48  ;;  %vm1274_vm1 = vcmp.lt.s32.totalorder %v1253_v50, 3  ;;  %vm1273_vm12 = vcmp.lt.s32.totalorder %v1253_v50, 2 }
 0x549   :  { %v1259_v51 = vor.u32 %v1258_v54, %v1257_v52  ;;  %v1262_v2 = vor.u32 %v1261_v10, %v1260_v53  ;;  %v1265_v3 = vor.u32 %v1264_v56, %v1263_v55  ;;  %v1268_v4 = vor.u32 %v1267_v58, %v1266_v57 }
 0x54a   :  { %v1271_v7 = vor.u32 %v1270_v60, %v1269_v59 }
 0x54b   :  { %v1277_v63 = vsel %vm1275_vm11, %v1265_v3, 2102212464  ;;  %v1280_v6 = vsel %vm1272_vm10, %v1259_v51, %v1262_v2  ;;  %v1284_v1 = vsel %vm1272_vm10, %v1262_v2, %v1265_v3  ;;  %v1281_v11 = vsel %vm1275_vm11, %v1268_v4, 920167782 }
 0x54c   :  { %v1285_v0 = vsel %vm1275_vm11, %v1271_v7, 1326507024  ;;  %v1282_v12 = vsel %vm1274_vm1, %v1265_v3, %v1281_v11  ;;  %v1276_v15 = vsel %vm1272_vm10, %v1256_v9, %v1259_v51  ;;  %v1278_v16 = vsel %vm1274_vm1, %v1262_v2, %v1277_v63 }
 0x54d   :  { %v1286_v8 = vsel %vm1274_vm1, %v1268_v4, %v1285_v0  ;;  %v1283_v17 = vsel %vm1273_vm12, %v1280_v6, %v1282_v12  ;;  %v1279_v24 = vsel %vm1273_vm12, %v1276_v15, %v1278_v16 }
 0x54e   :  { %v1287_v36 = vsel %vm1273_vm12, %v1284_v1, %v1286_v8  ;;  %v2296_v22 = vmul.u32.u64.low %v1288_v14, %v1283_v17  ;;  %v2297_v26 = vmul.u32.u64.high %v1288_v14, %v1283_v17, %v2296_v22  ;;  %v1295_v27 = vmul.u32 %v1288_v14, %v1279_v24  ;;  %v1346_v8 = vld [vmem:[#allocation2 + $0x38] sm:$0xff] }
 0x54f   :  { %v2293_v19 = vmul.u32.u64.low %v1288_v14, %v1287_v36  ;;  %v2294_v20 = vmul.u32.u64.high %v1288_v14, %v1287_v36, %v2293_v19 }
 0x550   :  { %v1298_v25 = vadd.s32 1, %v2297_v26 }
 0x551   :  { %vm1297_vm13 = vc.u32 %v2294_v20, %v2296_v22  ;;  %v1296_v43 = vadd.s32 %v2296_v22, %v2294_v20 }
 0x552   :  { %v1299_v29 = vsel %vm1297_vm13, %v1298_v25, %v2297_v26 }
 0x553   :  { %v1300_v5 = vadd.s32 %v1299_v29, %v1295_v27 }
 0x555   :  { %v1301_v31 = vadd.s32 536870912, %v1300_v5 }
 0x557   :  { %v1302_v34 = vshrl.u32 %v1301_v31, 30 }
 0x559   :  { %v1303_v47 = vshll.u32 %v1302_v34, 30  ;;  %v1326_v58 = vsub.s32 4, %v1302_v34 }
 0x55b   :  { %v1304_v37 = vsub.s32 %v1300_v5, %v1303_v47  ;;  %v1327_v60 = vsel %vm1242_vm15, %v1326_v58, %v1302_v34 }
 0x55c   :  { %v1329_v62 = vsel %vm1241_vm2, 0, %v1327_v60 }
 0x55d   :  { %v1306_v38 = vsub.s32 0, %v1304_v37  ;;  %v1333_v51 = vand.u32 3, %v1329_v62 }
 0x55f   :  { %v1578_v39 = vmin.u32 %v1306_v38, %v1304_v37  ;;  %vm1338_vm3 = vcmp.eq.s32.totalorder %v1333_v51, 2  ;;  %vm1335_vm4 = vcmp.eq.s32.totalorder %v1333_v51, 0  ;;  %vm1334_vm5 = vcmp.lt.s32.totalorder %v1333_v51, 2 }
 0x561   :  { %v1308_v40 = vclz %v1578_v39 }
 0x563   :  { %v1579_v18 = vadd.s32 4294967294, %v1308_v40 }
 0x565   :  { %vm1580_vm14 = vcmp.lt.s32.totalorder %v1579_v18, 0 }
 0x566   :  { %v1311_v42 = vsel %vm1580_vm14, 0, %v1579_v18 }
 0x567   :  { %v1312_v44 = vsub.s32 32, %v1311_v42  ;;  %v1316_v46 = vsub.s32 4294967266, %v1311_v42  ;;  %v1313_v13 = vshll.u32 %v1304_v37, %v1311_v42 }
 0x569   :  { %v1314_v48 = vshrl.u32 %v1296_v43, %v1312_v44  ;;  %v1317_v49 = vadd.s32 127, %v1316_v46 }
 0x56b   :  { %v1315_v50 = vor.u32 %v1314_v48, %v1313_v13  ;;  %v1318_v52 = vshll.u32 %v1317_v49, 23 }
 0x56d   :  { %v1319_v53 = vor.u32 4788187, %v1318_v52  ;;  %v1322_v10 = vcvt.s32.f32 %v1315_v50 }
 0x56f   :  { %v1320_v54 = vand.u32 2147483647, %v1319_v53 }
 0x571   :  { %v1323_v55 = vmul.f32 %v1322_v10, %v1320_v54 }
 0x573   :  { %v1324_v56 = vxor.u32 2147483648, %v1323_v55 }
 0x575   :  { %v1325_v57 = vsel %vm1242_vm15, %v1324_v56, %v1323_v55 }
 0x576   :  { %v1328_v59 = vsel %vm1241_vm2, %v2276_v41, %v1325_v57 }
 0x577   :  { %1833 = vcosq.f32 %v1328_v59 }
 0x578   :  { %1835 = vsinq.f32 %v1328_v59 }
 0x581   :  { %v1834_v2 = vpop.eup %1833 }
 0x582   :  { %v1836_v3 = vpop.eup %1835  ;;  %v1339_v4 = vxor.u32 2147483648, %v1834_v2 }
 0x583   :  { %v1336_v7 = vxor.u32 2147483648, %v1836_v3 }
 0x584   :  { %v1340_v63 = vsel %vm1338_vm3, %v1339_v4, %v1836_v3 }
 0x585   :  { %v1337_v6 = vsel %vm1335_vm4, %v1834_v2, %v1336_v7 }
 0x586   :  { %v1341_v45 = vsel %vm1334_vm5, %v1337_v6, %v1340_v63 }
 0x587   :  { %v1342_v1 = vsel %vm1332_vm6, nan, %v1341_v45 }
 0x588   :  { %v1343_v9 = vmul.f32 %v2271_v33, %v1342_v1 }
 0x608   :  { %v1234_v11 = vpop.f32.mrb[6].mxu0 }
 0x609   :  { %v1344_v0 = vadd.f32 %v1343_v9, %v1234_v11  ;;  %v1702_v12 = vpop.f32.mrb[7].mxu0 }
 0x60b   :  { %v1420_v14 = vmul.f32 %v2227_v61, %v1344_v0  ;;  %1712 = vmatmul.mubr.msk.f32.vlgmr.msra.gmra.mrb[6].mxu1 %vm50_vm0, %v1344_v0 }
 0x60d   :  { %v2311_v15 = vadd.f32 %v1420_v14, %v1346_v8 }
 0x60f   :  { %v1425_v16 = vand.u32 2139095040, %v2311_v15  ;;  %v1422_v41 = vand.u32 2147483647, %v2311_v15  ;;  %vm1424_vm13 = vcmp.lt.s32.totalorder %v2311_v15, 0  ;;  %vm1514_vm4 = vweird.f32 %v2311_v15 }
 0x611   :  { %v1426_v17 = vshrl.u32 %v1425_v16, 23  ;;  %v1429_v24 = vand.u32 8388607, %v1422_v41  ;;  %vm1423_vm14 = vcmp.le.f32.partialorder %v1422_v41, 0.7853982 }
 0x613   :  { %v1582_v36 = vadd.s32 4294967169, %v1426_v17  ;;  %v1430_v40 = vor.u32 8388608, %v1429_v24 }
 0x615   :  { %v1432_v19 = vadd.s32 1, %v1582_v36 }
 0x617   :  { %vm1433_vm7 = vcmp.gt.s32.totalorder %v1432_v19, 0 }
 0x618   :  { %v1434_v20 = vsel %vm1433_vm7, %v1432_v19, 0 }
 0x619   :  { %v1436_v22 = vand.u32 31, %v1434_v20  ;;  %v1435_v25 = vshrl.u32 %v1434_v20, 5 }
 0x61b   :  { %v1437_v26 = vsub.s32 32, %v1436_v22  ;;  %v1439_v61 = vshll.u32 %v1926_v30, %v1436_v22  ;;  %v1442_v27 = vshll.u32 %v1927_v32, %v1436_v22  ;;  %v1445_v31 = vshll.u32 %v1928_v35, %v1436_v22 }
 0x61c   :  { %v1448_v47 = vshll.u32 %v1923_v21, %v1436_v22  ;;  %v1451_v38 = vshll.u32 %v1924_v23, %v1436_v22  ;;  %vm1454_vm8 = vcmp.lt.s32.totalorder %v1435_v25, 1  ;;  %vm1457_vm9 = vcmp.lt.s32.totalorder %v1435_v25, 4 }
 0x61d   :  { %v1440_v29 = vshrl.u32 %v1927_v32, %v1437_v26  ;;  %v1443_v5 = vshrl.u32 %v1928_v35, %v1437_v26  ;;  %v1446_v34 = vshrl.u32 %v1923_v21, %v1437_v26  ;;  %v1449_v37 = vshrl.u32 %v1924_v23, %v1437_v26 }
 0x61e   :  { %v1452_v39 = vshrl.u32 %v1925_v28, %v1437_v26  ;;  %v1438_v48 = vshrl.u32 %v1926_v30, %v1437_v26  ;;  %vm1456_vm10 = vcmp.lt.s32.totalorder %v1435_v25, 3  ;;  %vm1455_vm11 = vcmp.lt.s32.totalorder %v1435_v25, 2 }
 0x61f   :  { %v1441_v18 = vor.u32 %v1440_v29, %v1439_v61  ;;  %v1444_v42 = vor.u32 %v1443_v5, %v1442_v27  ;;  %v1447_v43 = vor.u32 %v1446_v34, %v1445_v31  ;;  %v1450_v44 = vor.u32 %v1449_v37, %v1448_v47 }
 0x620   :  { %v1453_v32 = vor.u32 %v1452_v39, %v1451_v38  ;;  %v1470_v28 = vshll.u32 %v1430_v40, 8 }
 0x621   :  { %v1459_v46 = vsel %vm1457_vm9, %v1447_v43, 2102212464  ;;  %v1462_v35 = vsel %vm1454_vm8, %v1441_v18, %v1444_v42  ;;  %v1466_v13 = vsel %vm1454_vm8, %v1444_v42, %v1447_v43  ;;  %v1463_v21 = vsel %vm1457_vm9, %v1450_v44, 920167782 }
 0x622   :  { %v1467_v49 = vsel %vm1457_vm9, %v1453_v32, 1326507024  ;;  %v1464_v23 = vsel %vm1456_vm10, %v1447_v43, %v1463_v21  ;;  %v1458_v52 = vsel %vm1454_vm8, %v1438_v48, %v1441_v18  ;;  %v1460_v53 = vsel %vm1456_vm10, %v1444_v42, %v1459_v46 }
 0x623   :  { %v1468_v50 = vsel %vm1456_vm10, %v1450_v44, %v1467_v49  ;;  %v1465_v54 = vsel %vm1455_vm11, %v1462_v35, %v1464_v23  ;;  %v1461_v59 = vsel %vm1455_vm11, %v1458_v52, %v1460_v53 }
 0x624   :  { %v1469_v10 = vsel %vm1455_vm11, %v1466_v13, %v1468_v50  ;;  %v2331_v57 = vmul.u32.u64.low %v1470_v28, %v1465_v54  ;;  %v2332_v58 = vmul.u32.u64.high %v1470_v28, %v1465_v54, %v2331_v57  ;;  %v1477_v60 = vmul.u32 %v1470_v28, %v1461_v59 }
 0x625   :  { %v2328_v55 = vmul.u32.u64.low %v1470_v28, %v1469_v10  ;;  %v2329_v56 = vmul.u32.u64.high %v1470_v28, %v1469_v10, %v2328_v55 }
 0x626   :  { %v1480_v30 = vadd.s32 1, %v2332_v58 }
 0x627   :  { %vm1479_vm1 = vc.u32 %v2329_v56, %v2331_v57  ;;  %v1478_v11 = vadd.s32 %v2331_v57, %v2329_v56 }
 0x628   :  { %v1481_v62 = vsel %vm1479_vm1, %v1480_v30, %v2332_v58 }
 0x629   :  { %v1482_v51 = vadd.s32 %v1481_v62, %v1477_v60 }
 0x62b   :  { %v1483_v2 = vadd.s32 536870912, %v1482_v51 }
 0x62d   :  { %v1484_v3 = vshrl.u32 %v1483_v2, 30 }
 0x62f   :  { %v1485_v4 = vshll.u32 %v1484_v3, 30  ;;  %v1508_v61 = vsub.s32 4, %v1484_v3 }
 0x631   :  { %v1486_v7 = vsub.s32 %v1482_v51, %v1485_v4  ;;  %v1509_v29 = vsel %vm1424_vm13, %v1508_v61, %v1484_v3 }
 0x632   :  { %v1511_v5 = vsel %vm1423_vm14, 0, %v1509_v29 }
 0x633   :  { %v1488_v63 = vsub.s32 0, %v1486_v7  ;;  %v1515_v31 = vand.u32 3, %v1511_v5 }
 0x635   :  { %v1583_v6 = vmin.u32 %v1488_v63, %v1486_v7  ;;  %vm1520_vm15 = vcmp.eq.s32.totalorder %v1515_v31, 2  ;;  %vm1517_vm2 = vcmp.eq.s32.totalorder %v1515_v31, 0  ;;  %vm1516_vm3 = vcmp.lt.s32.totalorder %v1515_v31, 2 }
 0x637   :  { %v1490_v45 = vclz %v1583_v6 }
 0x639   :  { %v1584_v1 = vadd.s32 4294967294, %v1490_v45 }
 0x63b   :  { %vm1585_vm12 = vcmp.lt.s32.totalorder %v1584_v1, 0 }
 0x63c   :  { %v1493_v9 = vsel %vm1585_vm12, 0, %v1584_v1 }
 0x63d   :  { %v1494_v0 = vsub.s32 32, %v1493_v9  ;;  %v1498_v12 = vsub.s32 4294967266, %v1493_v9  ;;  %v1495_v8 = vshll.u32 %v1486_v7, %v1493_v9 }
 0x63f   :  { %v1496_v14 = vshrl.u32 %v1478_v11, %v1494_v0  ;;  %v1499_v16 = vadd.s32 127, %v1498_v12 }
 0x641   :  { %v1497_v17 = vor.u32 %v1496_v14, %v1495_v8  ;;  %v1500_v36 = vshll.u32 %v1499_v16, 23 }
 0x643   :  { %v1501_v19 = vor.u32 4788187, %v1500_v36  ;;  %v1504_v22 = vcvt.s32.f32 %v1497_v17 }
 0x645   :  { %v1502_v20 = vand.u32 2147483647, %v1501_v19 }
 0x647   :  { %v1505_v26 = vmul.f32 %v1504_v22, %v1502_v20 }
 0x649   :  { %v1506_v24 = vxor.u32 2147483648, %v1505_v26 }
 0x64b   :  { %v1507_v25 = vsel %vm1424_vm13, %v1506_v24, %v1505_v26 }
 0x64c   :  { %v1510_v27 = vsel %vm1423_vm14, %v2311_v15, %v1507_v25 }
 0x64d   :  { %1837 = vcosq.f32 %v1510_v27 }
 0x64e   :  { %1839 = vsinq.f32 %v1510_v27 }
 0x657   :  { %v1838_v34 = vpop.eup %1837 }
 0x658   :  { %v1840_v47 = vpop.eup %1839  ;;  %v1521_v37 = vxor.u32 2147483648, %v1838_v34 }
 0x659   :  { %v1518_v38 = vxor.u32 2147483648, %v1840_v47 }
 0x65a   :  { %v1522_v39 = vsel %vm1520_vm15, %v1521_v37, %v1840_v47 }
 0x65b   :  { %v1519_v40 = vsel %vm1517_vm2, %v1838_v34, %v1518_v38 }
 0x65c   :  { %v1523_v41 = vsel %vm1516_vm3, %v1519_v40, %v1522_v39 }
 0x65d   :  { %v1524_v18 = vsel %vm1514_vm4, nan, %v1523_v41 }
 0x65e   :  { %v1525_v42 = vmul.f32 %v2271_v33, %v1524_v18 }
 0x6de   :  { %v1416_v43 = vpop.f32.mrb[6].mxu1 }
 0x6df   :  { %v1526_v44 = vadd.f32 %v1525_v42, %v1416_v43  ;;  %v1713_v32 = vpop.f32.mrb[7].mxu1 }
 0x6e1   :  { %1527 = vst.msk [vmem:[#allocation7] sm:$0xff] %vm50_vm0, %v1526_v44 }
 0x6e2   :  { %1898 = shalt.err (!%p1895_p6)
}
 0x6e3   :  { %s1899_s24 = scalar_lea.hbm %s2361_s4, 128 }
 0x6e4   :  { %p1900_p7 = scmp.ne.s32.totalorder %s2361_s4, %s1899_s24  ;;  %p1903_p8 = scmp.lt.u32.totalorder %s1899_s24, %s2361_s4 }
 0x6e6   :  { %p1905_p9 = pnand %p1903_p8, %p1900_p7 }
 0x6e8   :  { %1908 = shalt.err (!%p1905_p9)
}
 0x6e9   :  { %1537 = dma.vmem_to_hbm [thread:$0]  %s1535_s20, 128, %s2361_s4, [#allocation4]  }
 0x6ea   :  { %1913 = dma.done.wait [#allocation4], 128  }
 0x6eb   :  { %1914 = vsyncadd [#allocation4], 4294967168 }
 0x6ec   :  { %1541 = vsyncpa [#allocation3], 1 }
 0x6ed   :  { %1542 = vsyncpa [#allocation6], 1 }
 0x6ee   :  { %1543 = vsyncpa [#allocation4], 1 }

</bundles_post_ra>
